<compile_context>
chip_gen: v7x
topology: tpu7x:2x2x1
jax: 0.10.0
libtpu: 0.0.40
codegen_flags: <defaults>
</compile_context>

<pallas_src>
import jax
import jax.numpy as jnp
from jax import lax
from jax.experimental import pallas as pl
from jax.experimental.pallas import tpu as pltpu


# -----------------------------------------------------------------------------
# Fused kernel: both projections + softmaxes + bidirectional LSTM, per batch b.
# -----------------------------------------------------------------------------
def _fused_output_layer_kernel(
    g_ref, m_ref,                       # (1,T,4H), (1,T,H) activations
    wg_ref,                             # (4H, 2)  [wg_p1 | wg_p2] columns
    wmx_ref, bmx_ref,                   # (H, 8Hh+1) [wih_f|wih_b|wm_p1], (1, 8Hh+1)
    whh_f_ref, whh_b_ref,               # (Hh, 4Hh) recurrent weights
    wm2f_ref, wm2b_ref, b2_ref,         # (Hh,1), (Hh,1), (1,1) p2 m-side
    h0_ref, c0_ref,                     # (1, 2, Hh) initial states (fwd, bwd)
    p1_ref, p2_ref,                     # (1, 1, T) outputs
    gxf_scr, gxb_scr,                   # VMEM (T, 4Hh) gate precomputes
    m2f_scr, m2b_scr,                   # VMEM (T, Hh) per-direction LSTM outputs
):
    T, H = m_ref.shape[1], m_ref.shape[2]
    Hh = H // 2
    G = 4 * Hh

    g2d = g_ref[0]                                   # (T, 4H)
    m2d = m_ref[0]                                   # (T, H)

    # ---- g-side of BOTH logits: one MXU pass over g. -----------------------
    gside = jnp.dot(g2d, wg_ref[...],
                    preferred_element_type=jnp.float32)              # (T, 2)

    # ---- stacked m matmul: LSTM gate precompute (2 dirs) + p1 m-side. ------
    mx = jnp.dot(m2d, wmx_ref[...],
                 preferred_element_type=jnp.float32) + bmx_ref[...]  # (T, 2G+1)
    gxf_scr[...] = mx[:, :G]
    gxb_scr[...] = mx[:, G:2 * G]
    mside1 = mx[:, 2 * G:2 * G + 1]                  # (T, 1), includes b_p1

    # ---- bidirectional LSTM: fwd & bwd interleaved in one loop. ------------
    whh_f = whh_f_ref[...]
    whh_b = whh_b_ref[...]
    h0 = h0_ref[0]                                   # (2, Hh): row0 fwd, row1 bwd
    c0 = c0_ref[0]

    def lstm_update(gates, c):                       # gates: (1, 4Hh), torch i,f,g,o
        i = jax.nn.sigmoid(gates[:, 0 * Hh:1 * Hh])
        f = jax.nn.sigmoid(gates[:, 1 * Hh:2 * Hh])
        gg = jnp.tanh(gates[:, 2 * Hh:3 * Hh])
        o = jax.nn.sigmoid(gates[:, 3 * Hh:4 * Hh])
        c_new = f * c + i * gg
        h_new = o * jnp.tanh(c_new)
        return h_new, c_new

    def step(s, carry):
        h_f, c_f, h_b, c_b = carry
        t_f = s
        t_b = T - 1 - s
        gates_f = gxf_scr[pl.ds(t_f, 1), :] + jnp.dot(
            h_f, whh_f, preferred_element_type=jnp.float32)
        gates_b = gxb_scr[pl.ds(t_b, 1), :] + jnp.dot(
            h_b, whh_b, preferred_element_type=jnp.float32)
        h_f, c_f = lstm_update(gates_f, c_f)
        h_b, c_b = lstm_update(gates_b, c_b)
        m2f_scr[pl.ds(t_f, 1), :] = h_f              # direct ref writes, no
        m2b_scr[pl.ds(t_b, 1), :] = h_b              # dynamic_update_slice carry
        return h_f, c_f, h_b, c_b

    lax.fori_loop(0, T, step,
                  (h0[0:1, :], c0[0:1, :], h0[1:2, :], c0[1:2, :]),
                  unroll=True)

    # ---- p2 m-side + both softmaxes. ----------------------------------------
    mside2 = (jnp.dot(m2f_scr[...], wm2f_ref[...],
                      preferred_element_type=jnp.float32)
              + jnp.dot(m2b_scr[...], wm2b_ref[...],
                        preferred_element_type=jnp.float32)
              + b2_ref[...])                         # (T, 1)

    logits = gside + jnp.concatenate([mside1, mside2], axis=1)       # (T, 2)
    logits = jnp.transpose(logits)                                   # (2, T) lane-dense
    mx_ = jnp.max(logits, axis=-1, keepdims=True)
    e = jnp.exp(logits - mx_)
    denom = jnp.sum(e, axis=-1, keepdims=True)
    p = e * pl.reciprocal(denom, approx=True)                        # (2, T)
    p1_ref[0] = p[0:1, :]
    p2_ref[0] = p[1:2, :]


# -----------------------------------------------------------------------------
# Wrapper: weight repacking (tiny, once per jit call) + pallas_call.
# -----------------------------------------------------------------------------
def output_layer_forward(g, m, params, h0, c0):
    B, T, H4 = g.shape
    H = m.shape[-1]
    Hh = H // 2
    G = 4 * Hh

    w1, b1 = params["w_p1"], params["b_p1"]
    w2, b2 = params["w_p2"], params["b_p2"]

    # Stacked layouts so every in-kernel op is a plain x @ W.
    wg_stack = jnp.stack([w1[0, :H4], w2[0, :H4]], axis=1)            # (4H, 2)
    wmx = jnp.concatenate(
        [params["wih_f"], params["wih_b"], w1[0, H4:].reshape(H, 1)], axis=1)
    bmx = jnp.concatenate(
        [params["b_f"], params["b_b"], b1.reshape(1, 1)], axis=1)     # (1, 2G+1)
    wm2f = w2[0, H4:H4 + Hh].reshape(Hh, 1)
    wm2b = w2[0, H4 + Hh:].reshape(Hh, 1)
    b2v = b2.reshape(1, 1)

    h0r = jnp.swapaxes(h0, 0, 1)                                      # (B, 2, Hh)
    c0r = jnp.swapaxes(c0, 0, 1)

    full2d = lambda b: (0, 0)

    p1, p2 = pl.pallas_call(
        _fused_output_layer_kernel,
        out_shape=(jax.ShapeDtypeStruct((B, 1, T), jnp.float32),
                   jax.ShapeDtypeStruct((B, 1, T), jnp.float32)),
        grid_spec=pltpu.PrefetchScalarGridSpec(
            num_scalar_prefetch=0,
            grid=(B,),
            in_specs=[
                pl.BlockSpec((1, T, H4), lambda b: (b, 0, 0)),        # g
                pl.BlockSpec((1, T, H), lambda b: (b, 0, 0)),         # m
                pl.BlockSpec((H4, 2), full2d),                        # wg_stack
                pl.BlockSpec((H, 2 * G + 1), full2d),                 # wmx
                pl.BlockSpec((1, 2 * G + 1), full2d),                 # bmx
                pl.BlockSpec((Hh, G), full2d),                        # whh_f
                pl.BlockSpec((Hh, G), full2d),                        # whh_b
                pl.BlockSpec((Hh, 1), full2d),                        # wm2f
                pl.BlockSpec((Hh, 1), full2d),                        # wm2b
                pl.BlockSpec((1, 1), full2d),                         # b_p2
                pl.BlockSpec((1, 2, Hh), lambda b: (b, 0, 0)),        # h0
                pl.BlockSpec((1, 2, Hh), lambda b: (b, 0, 0)),        # c0
            ],
            out_specs=[
                pl.BlockSpec((1, 1, T), lambda b: (b, 0, 0)),
                pl.BlockSpec((1, 1, T), lambda b: (b, 0, 0)),
            ],
            scratch_shapes=[
                pltpu.VMEM((T, G), jnp.float32),
                pltpu.VMEM((T, G), jnp.float32),
                pltpu.VMEM((T, Hh), jnp.float32),
                pltpu.VMEM((T, Hh), jnp.float32),
            ],
        ),
        compiler_params=pltpu.CompilerParams(
            dimension_semantics=("parallel",),
            vmem_limit_bytes=32 * 1024 * 1024,
        ),
    )(g, m, wg_stack, wmx, bmx, params["whh_f"], params["whh_b"],
      wm2f, wm2b, b2v, h0r, c0r)
    return p1.reshape(B, T), p2.reshape(B, T)


# -----------------------------------------------------------------------------
# Pure-JAX reference (matches the torch module's math, f32-exact matmuls).
# -----------------------------------------------------------------------------
def ref_forward(g, m, params, h0, c0):
    hp = lax.Precision.HIGHEST
    B, T, H = m.shape
    Hh = H // 2

    def lin_softmax(gg, mm, w, b):
        concat = jnp.concatenate([gg, mm], axis=2)
        logits = (jnp.dot(concat, w.T, precision=hp) + b)[..., 0]     # (B, T)
        return jax.nn.softmax(logits, axis=1)

    def cell(x_t, h, c, wih, whh, bias):
        gates = (jnp.dot(x_t, wih, precision=hp)
                 + jnp.dot(h, whh, precision=hp) + bias)
        i = jax.nn.sigmoid(gates[:, :Hh])
        f = jax.nn.sigmoid(gates[:, Hh:2 * Hh])
        gg = jnp.tanh(gates[:, 2 * Hh:3 * Hh])
        o = jax.nn.sigmoid(gates[:, 3 * Hh:])
        c = f * c + i * gg
        h = o * jnp.tanh(c)
        return h, c

    xs = jnp.swapaxes(m, 0, 1)                                        # (T, B, H)

    def scan_fn(wih, whh, bias):
        def f(carry, x_t):
            h, c = carry
            h, c = cell(x_t, h, c, wih, whh, bias)
            return (h, c), h
        return f

    _, hs_f = lax.scan(scan_fn(params["wih_f"], params["whh_f"], params["b_f"]),
                       (h0[0], c0[0]), xs)
    _, hs_b = lax.scan(scan_fn(params["wih_b"], params["whh_b"], params["b_b"]),
                       (h0[1], c0[1]), xs[::-1])
    hs_b = hs_b[::-1]
    m2 = jnp.concatenate([jnp.swapaxes(hs_f, 0, 1), jnp.swapaxes(hs_b, 0, 1)],
                         axis=-1)

    p1 = lin_softmax(g, m, params["w_p1"], params["b_p1"])
    p2 = lin_softmax(g, m2, params["w_p2"], params["b_p2"])
    return p1, p2


# -----------------------------------------------------------------------------
# Main
# -----------------------------------------------------------------------------
if __name__ == "__main__":
    B, T, H = 2, 8, 32          # batch, seq_len, hidden_size
    Hh = H // 2

    key = jax.random.PRNGKey(0)
    keys = jax.random.split(key, 16)

    g = jax.random.normal(keys[0], (B, T, 4 * H), jnp.float32)
    m = jax.random.normal(keys[1], (B, T, H), jnp.float32)

    s_lin = 1.0 / jnp.sqrt(5.0 * H)
    s_lstm = 1.0 / jnp.sqrt(float(Hh))

    params = {
        # Linear(5H, 1) in PyTorch convention: weight (1, 5H), bias (1,).
        "w_p1": jax.random.uniform(keys[2], (1, 5 * H), jnp.float32, -s_lin, s_lin),
        "b_p1": jax.random.uniform(keys[3], (1,), jnp.float32, -s_lin, s_lin),
        "w_p2": jax.random.uniform(keys[4], (1, 5 * H), jnp.float32, -s_lin, s_lin),
        "b_p2": jax.random.uniform(keys[5], (1,), jnp.float32, -s_lin, s_lin),
        # LSTM weights pre-transposed for x @ W: wih (H, 4*Hh), whh (Hh, 4*Hh),
        # combined bias (b_ih + b_hh) as (1, 4*Hh). Gate order: i, f, g, o.
        "wih_f": jax.random.uniform(keys[6], (H, 4 * Hh), jnp.float32, -s_lstm, s_lstm),
        "whh_f": jax.random.uniform(keys[7], (Hh, 4 * Hh), jnp.float32, -s_lstm, s_lstm),
        "b_f": jax.random.uniform(keys[8], (1, 4 * Hh), jnp.float32, -s_lstm, s_lstm),
        "wih_b": jax.random.uniform(keys[9], (H, 4 * Hh), jnp.float32, -s_lstm, s_lstm),
        "whh_b": jax.random.uniform(keys[10], (Hh, 4 * Hh), jnp.float32, -s_lstm, s_lstm),
        "b_b": jax.random.uniform(keys[11], (1, 4 * Hh), jnp.float32, -s_lstm, s_lstm),
    }

    # The torch module samples fresh N(0, 0.01) initial states each forward;
    # sampled deterministically here (PyTorch layout: (2, B, Hh), dir 0=fwd).
    h0 = 0.01 * jax.random.normal(keys[12], (2, B, Hh), jnp.float32)
    c0 = 0.01 * jax.random.normal(keys[13], (2, B, Hh), jnp.float32)

    fwd = jax.jit(output_layer_forward)
    p1, p2 = fwd(g, m, params, h0, c0)
    jax.block_until_ready((p1, p2))

    # Validate against the pure-JAX reference. Tolerance accounts for the
    # EUP approx-reciprocal softmax denominator and MXU pass differences.
    r1, r2 = jax.jit(ref_forward)(g, m, params, h0, c0)
    jax.block_until_ready((r1, r2))
    assert p1.shape == (B, T) and p2.shape == (B, T)
    assert jnp.allclose(p1, r1, rtol=2e-3, atol=2e-3), "p1 mismatch"
    assert jnp.allclose(p2, r2, rtol=2e-3, atol=2e-3), "p2 mismatch"

    print("KERNEL_OK")
</pallas_src>

<mosaic_0001>
module attributes {stable_mosaic.version = 11 : i64} {
  func.func @_fused_output_layer_kernel(%arg0: i32, %arg1: memref<1x8x128xf32, #tpu.memory_space<vmem>>, %arg2: memref<1x8x32xf32, #tpu.memory_space<vmem>>, %arg3: memref<128x2xf32, #tpu.memory_space<vmem>>, %arg4: memref<32x129xf32, #tpu.memory_space<vmem>>, %arg5: memref<1x129xf32, #tpu.memory_space<vmem>>, %arg6: memref<16x64xf32, #tpu.memory_space<vmem>>, %arg7: memref<16x64xf32, #tpu.memory_space<vmem>>, %arg8: memref<16x1xf32, #tpu.memory_space<vmem>>, %arg9: memref<16x1xf32, #tpu.memory_space<vmem>>, %arg10: memref<1x1xf32, #tpu.memory_space<vmem>>, %arg11: memref<1x2x16xf32, #tpu.memory_space<vmem>>, %arg12: memref<1x2x16xf32, #tpu.memory_space<vmem>>, %arg13: memref<1x1x8xf32, #tpu.memory_space<vmem>>, %arg14: memref<1x1x8xf32, #tpu.memory_space<vmem>>, %arg15: memref<8x64xf32, #tpu.memory_space<vmem>>, %arg16: memref<8x64xf32, #tpu.memory_space<vmem>>, %arg17: memref<8x16xf32, #tpu.memory_space<vmem>>, %arg18: memref<8x16xf32, #tpu.memory_space<vmem>>) attributes {dimension_semantics = [#tpu.dimension_semantics<parallel>], iteration_bounds = array<i64: 2>, scalar_prefetch = 0 : i64, scratch_operands = 4 : i64, tpu.core_type = #tpu.core_type<tc>, window_params = [{transform_indices = @transform_0, window_bounds = array<i64: 1, 8, 128>}, {transform_indices = @transform_1, window_bounds = array<i64: 1, 8, 32>}, {pipeline_mode = #tpu.pipeline_mode<synchronous>, transform_indices = @transform_2, window_bounds = array<i64: 128, 2>}, {pipeline_mode = #tpu.pipeline_mode<synchronous>, transform_indices = @transform_3, window_bounds = array<i64: 32, 129>}, {pipeline_mode = #tpu.pipeline_mode<synchronous>, transform_indices = @transform_4, window_bounds = array<i64: 1, 129>}, {pipeline_mode = #tpu.pipeline_mode<synchronous>, transform_indices = @transform_5, window_bounds = array<i64: 16, 64>}, {pipeline_mode = #tpu.pipeline_mode<synchronous>, transform_indices = @transform_6, window_bounds = array<i64: 16, 64>}, {pipeline_mode = #tpu.pipeline_mode<synchronous>, transform_indices = @transform_7, window_bounds = array<i64: 16, 1>}, {pipeline_mode = #tpu.pipeline_mode<synchronous>, transform_indices = @transform_8, window_bounds = array<i64: 16, 1>}, {pipeline_mode = #tpu.pipeline_mode<synchronous>, transform_indices = @transform_9, window_bounds = array<i64: 1, 1>}, {transform_indices = @transform_10, window_bounds = array<i64: 1, 2, 16>}, {transform_indices = @transform_11, window_bounds = array<i64: 1, 2, 16>}, {transform_indices = @transform_12, window_bounds = array<i64: 1, 1, 8>}, {transform_indices = @transform_13, window_bounds = array<i64: 1, 1, 8>}]} {
    %c0 = arith.constant 0 : index
    %c0_0 = arith.constant 0 : index
    %c0_1 = arith.constant 0 : index
    %0 = vector.load %arg1[%c0, %c0_0, %c0_1] : memref<1x8x128xf32, #tpu.memory_space<vmem>>, vector<1x8x128xf32>
    %1 = vector.shape_cast %0 : vector<1x8x128xf32> to vector<8x128xf32>
    %c0_2 = arith.constant 0 : index
    %c0_3 = arith.constant 0 : index
    %c0_4 = arith.constant 0 : index
    %2 = vector.load %arg2[%c0_2, %c0_3, %c0_4] : memref<1x8x32xf32, #tpu.memory_space<vmem>>, vector<1x8x32xf32>
    %3 = vector.shape_cast %2 : vector<1x8x32xf32> to vector<8x32xf32>
    %c0_5 = arith.constant 0 : index
    %c0_6 = arith.constant 0 : index
    %4 = vector.load %arg3[%c0_5, %c0_6] : memref<128x2xf32, #tpu.memory_space<vmem>>, vector<128x2xf32>
    %cst = arith.constant dense<0.000000e+00> : vector<8x2xf32>
    %5 = tpu.matmul %1, %4, %cst {dimension_numbers = #tpu.dot_dimension_numbers<[1], [0], [0], [1], [0, 0, 1, 1], [], []>} : vector<8x128xf32>, vector<128x2xf32>, vector<8x2xf32> -> vector<8x2xf32>
    %c0_7 = arith.constant 0 : index
    %c0_8 = arith.constant 0 : index
    %6 = vector.load %arg4[%c0_7, %c0_8] : memref<32x129xf32, #tpu.memory_space<vmem>>, vector<32x129xf32>
    %cst_9 = arith.constant dense<0.000000e+00> : vector<8x129xf32>
    %7 = tpu.matmul %3, %6, %cst_9 {dimension_numbers = #tpu.dot_dimension_numbers<[1], [0], [0], [1], [0, 0, 1, 1], [], []>} : vector<8x32xf32>, vector<32x129xf32>, vector<8x129xf32> -> vector<8x129xf32>
    %c0_10 = arith.constant 0 : index
    %c0_11 = arith.constant 0 : index
    %8 = vector.load %arg5[%c0_10, %c0_11] : memref<1x129xf32, #tpu.memory_space<vmem>>, vector<1x129xf32>
    %9 = vector.broadcast %8 : vector<1x129xf32> to vector<8x129xf32>
    %10 = arith.addf %7, %9 : vector<8x129xf32>
    %11 = vector.extract_strided_slice %10 {offsets = [0, 0], sizes = [8, 64], strides = [1, 1]} : vector<8x129xf32> to vector<8x64xf32>
    %c0_12 = arith.constant 0 : index
    %c0_13 = arith.constant 0 : index
    %12 = vector.load %arg15[%c0_12, %c0_13] : memref<8x64xf32, #tpu.memory_space<vmem>>, vector<8x64xf32>
    tpu.vector_store %arg15[%c0_12, %c0_13], %11 {strides = array<i32>} : memref<8x64xf32, #tpu.memory_space<vmem>>, vector<8x64xf32>,
    %13 = vector.extract_strided_slice %10 {offsets = [0, 64], sizes = [8, 64], strides = [1, 1]} : vector<8x129xf32> to vector<8x64xf32>
    %c0_14 = arith.constant 0 : index
    %c0_15 = arith.constant 0 : index
    %14 = vector.load %arg16[%c0_14, %c0_15] : memref<8x64xf32, #tpu.memory_space<vmem>>, vector<8x64xf32>
    tpu.vector_store %arg16[%c0_14, %c0_15], %13 {strides = array<i32>} : memref<8x64xf32, #tpu.memory_space<vmem>>, vector<8x64xf32>,
    %15 = vector.extract_strided_slice %10 {offsets = [0, 128], sizes = [8, 1], strides = [1, 1]} : vector<8x129xf32> to vector<8x1xf32>
    %c0_16 = arith.constant 0 : index
    %c0_17 = arith.constant 0 : index
    %16 = vector.load %arg6[%c0_16, %c0_17] : memref<16x64xf32, #tpu.memory_space<vmem>>, vector<16x64xf32>
    %c0_18 = arith.constant 0 : index
    %c0_19 = arith.constant 0 : index
    %17 = vector.load %arg7[%c0_18, %c0_19] : memref<16x64xf32, #tpu.memory_space<vmem>>, vector<16x64xf32>
    %c0_20 = arith.constant 0 : index
    %c0_21 = arith.constant 0 : index
    %c0_22 = arith.constant 0 : index
    %18 = vector.load %arg11[%c0_20, %c0_21, %c0_22] : memref<1x2x16xf32, #tpu.memory_space<vmem>>, vector<1x2x16xf32>
    %19 = vector.shape_cast %18 : vector<1x2x16xf32> to vector<2x16xf32>
    %c0_23 = arith.constant 0 : index
    %c0_24 = arith.constant 0 : index
    %c0_25 = arith.constant 0 : index
    %20 = vector.load %arg12[%c0_23, %c0_24, %c0_25] : memref<1x2x16xf32, #tpu.memory_space<vmem>>, vector<1x2x16xf32>
    %21 = vector.shape_cast %20 : vector<1x2x16xf32> to vector<2x16xf32>
    %22 = vector.extract_strided_slice %19 {offsets = [0, 0], sizes = [1, 16], strides = [1, 1]} : vector<2x16xf32> to vector<1x16xf32>
    %23 = vector.extract_strided_slice %21 {offsets = [0, 0], sizes = [1, 16], strides = [1, 1]} : vector<2x16xf32> to vector<1x16xf32>
    %24 = vector.extract_strided_slice %19 {offsets = [1, 0], sizes = [1, 16], strides = [1, 1]} : vector<2x16xf32> to vector<1x16xf32>
    %25 = vector.extract_strided_slice %21 {offsets = [1, 0], sizes = [1, 16], strides = [1, 1]} : vector<2x16xf32> to vector<1x16xf32>
    %c0_i32 = arith.constant 0 : i32
    %c7_i32 = arith.constant 7 : i32
    %26 = arith.subi %c7_i32, %c0_i32 : i32
    %27 = arith.index_cast %c0_i32 : i32 to index
    %c0_26 = arith.constant 0 : index
    %28 = vector.load %arg15[%27, %c0_26] : memref<8x64xf32, #tpu.memory_space<vmem>>, vector<1x64xf32>
    %cst_27 = arith.constant dense<0.000000e+00> : vector<1x64xf32>
    %29 = tpu.matmul %22, %16, %cst_27 {dimension_numbers = #tpu.dot_dimension_numbers<[1], [0], [0], [1], [0, 0, 1, 1], [], []>} : vector<1x16xf32>, vector<16x64xf32>, vector<1x64xf32> -> vector<1x64xf32>
    %30 = arith.addf %28, %29 : vector<1x64xf32>
    %31 = arith.index_cast %26 : i32 to index
    %c0_28 = arith.constant 0 : index
    %32 = vector.load %arg16[%31, %c0_28] : memref<8x64xf32, #tpu.memory_space<vmem>>, vector<1x64xf32>
    %cst_29 = arith.constant dense<0.000000e+00> : vector<1x64xf32>
    %33 = tpu.matmul %24, %17, %cst_29 {dimension_numbers = #tpu.dot_dimension_numbers<[1], [0], [0], [1], [0, 0, 1, 1], [], []>} : vector<1x16xf32>, vector<16x64xf32>, vector<1x64xf32> -> vector<1x64xf32>
    %34 = arith.addf %32, %33 : vector<1x64xf32>
    %35 = vector.extract_strided_slice %30 {offsets = [0, 0], sizes = [1, 16], strides = [1, 1]} : vector<1x64xf32> to vector<1x16xf32>
    %36 = arith.negf %35 : vector<1x16xf32>
    %37 = math.exp %36 : vector<1x16xf32>
    %cst_30 = arith.constant 1.000000e+00 : f32
    %38 = vector.broadcast %cst_30 : f32 to vector<1x16xf32>
    %39 = arith.addf %38, %37 : vector<1x16xf32>
    %40 = arith.divf %38, %39 : vector<1x16xf32>
    %41 = vector.extract_strided_slice %30 {offsets = [0, 16], sizes = [1, 16], strides = [1, 1]} : vector<1x64xf32> to vector<1x16xf32>
    %42 = arith.negf %41 : vector<1x16xf32>
    %43 = math.exp %42 : vector<1x16xf32>
    %cst_31 = arith.constant 1.000000e+00 : f32
    %44 = vector.broadcast %cst_31 : f32 to vector<1x16xf32>
    %45 = arith.addf %44, %43 : vector<1x16xf32>
    %46 = arith.divf %44, %45 : vector<1x16xf32>
    %47 = vector.extract_strided_slice %30 {offsets = [0, 32], sizes = [1, 16], strides = [1, 1]} : vector<1x64xf32> to vector<1x16xf32>
    %48 = math.tanh %47 : vector<1x16xf32>
    %49 = vector.extract_strided_slice %30 {offsets = [0, 48], sizes = [1, 16], strides = [1, 1]} : vector<1x64xf32> to vector<1x16xf32>
    %50 = arith.negf %49 : vector<1x16xf32>
    %51 = math.exp %50 : vector<1x16xf32>
    %cst_32 = arith.constant 1.000000e+00 : f32
    %52 = vector.broadcast %cst_32 : f32 to vector<1x16xf32>
    %53 = arith.addf %52, %51 : vector<1x16xf32>
    %54 = arith.divf %52, %53 : vector<1x16xf32>
    %55 = arith.mulf %46, %23 : vector<1x16xf32>
    %56 = arith.mulf %40, %48 : vector<1x16xf32>
    %57 = arith.addf %55, %56 : vector<1x16xf32>
    %58 = math.tanh %57 : vector<1x16xf32>
    %59 = arith.mulf %54, %58 : vector<1x16xf32>
    %60 = vector.extract_strided_slice %34 {offsets = [0, 0], sizes = [1, 16], strides = [1, 1]} : vector<1x64xf32> to vector<1x16xf32>
    %61 = arith.negf %60 : vector<1x16xf32>
    %62 = math.exp %61 : vector<1x16xf32>
    %cst_33 = arith.constant 1.000000e+00 : f32
    %63 = vector.broadcast %cst_33 : f32 to vector<1x16xf32>
    %64 = arith.addf %63, %62 : vector<1x16xf32>
    %65 = arith.divf %63, %64 : vector<1x16xf32>
    %66 = vector.extract_strided_slice %34 {offsets = [0, 16], sizes = [1, 16], strides = [1, 1]} : vector<1x64xf32> to vector<1x16xf32>
    %67 = arith.negf %66 : vector<1x16xf32>
    %68 = math.exp %67 : vector<1x16xf32>
    %cst_34 = arith.constant 1.000000e+00 : f32
    %69 = vector.broadcast %cst_34 : f32 to vector<1x16xf32>
    %70 = arith.addf %69, %68 : vector<1x16xf32>
    %71 = arith.divf %69, %70 : vector<1x16xf32>
    %72 = vector.extract_strided_slice %34 {offsets = [0, 32], sizes = [1, 16], strides = [1, 1]} : vector<1x64xf32> to vector<1x16xf32>
    %73 = math.tanh %72 : vector<1x16xf32>
    %74 = vector.extract_strided_slice %34 {offsets = [0, 48], sizes = [1, 16], strides = [1, 1]} : vector<1x64xf32> to vector<1x16xf32>
    %75 = arith.negf %74 : vector<1x16xf32>
    %76 = math.exp %75 : vector<1x16xf32>
    %cst_35 = arith.constant 1.000000e+00 : f32
    %77 = vector.broadcast %cst_35 : f32 to vector<1x16xf32>
    %78 = arith.addf %77, %76 : vector<1x16xf32>
    %79 = arith.divf %77, %78 : vector<1x16xf32>
    %80 = arith.mulf %71, %25 : vector<1x16xf32>
    %81 = arith.mulf %65, %73 : vector<1x16xf32>
    %82 = arith.addf %80, %81 : vector<1x16xf32>
    %83 = math.tanh %82 : vector<1x16xf32>
    %84 = arith.mulf %79, %83 : vector<1x16xf32>
    %85 = arith.index_cast %c0_i32 : i32 to index
    %c0_36 = arith.constant 0 : index
    %86 = vector.load %arg17[%85, %c0_36] : memref<8x16xf32, #tpu.memory_space<vmem>>, vector<1x16xf32>
    tpu.vector_store %arg17[%85, %c0_36], %59 {strides = array<i32>} : memref<8x16xf32, #tpu.memory_space<vmem>>, vector<1x16xf32>,
    %87 = arith.index_cast %26 : i32 to index
    %c0_37 = arith.constant 0 : index
    %88 = vector.load %arg18[%87, %c0_37] : memref<8x16xf32, #tpu.memory_space<vmem>>, vector<1x16xf32>
    tpu.vector_store %arg18[%87, %c0_37], %84 {strides = array<i32>} : memref<8x16xf32, #tpu.memory_space<vmem>>, vector<1x16xf32>,
    %c1_i32 = arith.constant 1 : i32
    %c7_i32_38 = arith.constant 7 : i32
    %89 = arith.subi %c7_i32_38, %c1_i32 : i32
    %90 = arith.index_cast %c1_i32 : i32 to index
    %c0_39 = arith.constant 0 : index
    %91 = vector.load %arg15[%90, %c0_39] : memref<8x64xf32, #tpu.memory_space<vmem>>, vector<1x64xf32>
    %cst_40 = arith.constant dense<0.000000e+00> : vector<1x64xf32>
    %92 = tpu.matmul %59, %16, %cst_40 {dimension_numbers = #tpu.dot_dimension_numbers<[1], [0], [0], [1], [0, 0, 1, 1], [], []>} : vector<1x16xf32>, vector<16x64xf32>, vector<1x64xf32> -> vector<1x64xf32>
    %93 = arith.addf %91, %92 : vector<1x64xf32>
    %94 = arith.index_cast %89 : i32 to index
    %c0_41 = arith.constant 0 : index
    %95 = vector.load %arg16[%94, %c0_41] : memref<8x64xf32, #tpu.memory_space<vmem>>, vector<1x64xf32>
    %cst_42 = arith.constant dense<0.000000e+00> : vector<1x64xf32>
    %96 = tpu.matmul %84, %17, %cst_42 {dimension_numbers = #tpu.dot_dimension_numbers<[1], [0], [0], [1], [0, 0, 1, 1], [], []>} : vector<1x16xf32>, vector<16x64xf32>, vector<1x64xf32> -> vector<1x64xf32>
    %97 = arith.addf %95, %96 : vector<1x64xf32>
    %98 = vector.extract_strided_slice %93 {offsets = [0, 0], sizes = [1, 16], strides = [1, 1]} : vector<1x64xf32> to vector<1x16xf32>
    %99 = arith.negf %98 : vector<1x16xf32>
    %100 = math.exp %99 : vector<1x16xf32>
    %cst_43 = arith.constant 1.000000e+00 : f32
    %101 = vector.broadcast %cst_43 : f32 to vector<1x16xf32>
    %102 = arith.addf %101, %100 : vector<1x16xf32>
    %103 = arith.divf %101, %102 : vector<1x16xf32>
    %104 = vector.extract_strided_slice %93 {offsets = [0, 16], sizes = [1, 16], strides = [1, 1]} : vector<1x64xf32> to vector<1x16xf32>
    %105 = arith.negf %104 : vector<1x16xf32>
    %106 = math.exp %105 : vector<1x16xf32>
    %cst_44 = arith.constant 1.000000e+00 : f32
    %107 = vector.broadcast %cst_44 : f32 to vector<1x16xf32>
    %108 = arith.addf %107, %106 : vector<1x16xf32>
    %109 = arith.divf %107, %108 : vector<1x16xf32>
    %110 = vector.extract_strided_slice %93 {offsets = [0, 32], sizes = [1, 16], strides = [1, 1]} : vector<1x64xf32> to vector<1x16xf32>
    %111 = math.tanh %110 : vector<1x16xf32>
    %112 = vector.extract_strided_slice %93 {offsets = [0, 48], sizes = [1, 16], strides = [1, 1]} : vector<1x64xf32> to vector<1x16xf32>
    %113 = arith.negf %112 : vector<1x16xf32>
    %114 = math.exp %113 : vector<1x16xf32>
    %cst_45 = arith.constant 1.000000e+00 : f32
    %115 = vector.broadcast %cst_45 : f32 to vector<1x16xf32>
    %116 = arith.addf %115, %114 : vector<1x16xf32>
    %117 = arith.divf %115, %116 : vector<1x16xf32>
    %118 = arith.mulf %109, %57 : vector<1x16xf32>
    %119 = arith.mulf %103, %111 : vector<1x16xf32>
    %120 = arith.addf %118, %119 : vector<1x16xf32>
    %121 = math.tanh %120 : vector<1x16xf32>
    %122 = arith.mulf %117, %121 : vector<1x16xf32>
    %123 = vector.extract_strided_slice %97 {offsets = [0, 0], sizes = [1, 16], strides = [1, 1]} : vector<1x64xf32> to vector<1x16xf32>
    %124 = arith.negf %123 : vector<1x16xf32>
    %125 = math.exp %124 : vector<1x16xf32>
    %cst_46 = arith.constant 1.000000e+00 : f32
    %126 = vector.broadcast %cst_46 : f32 to vector<1x16xf32>
    %127 = arith.addf %126, %125 : vector<1x16xf32>
    %128 = arith.divf %126, %127 : vector<1x16xf32>
    %129 = vector.extract_strided_slice %97 {offsets = [0, 16], sizes = [1, 16], strides = [1, 1]} : vector<1x64xf32> to vector<1x16xf32>
    %130 = arith.negf %129 : vector<1x16xf32>
    %131 = math.exp %130 : vector<1x16xf32>
    %cst_47 = arith.constant 1.000000e+00 : f32
    %132 = vector.broadcast %cst_47 : f32 to vector<1x16xf32>
    %133 = arith.addf %132, %131 : vector<1x16xf32>
    %134 = arith.divf %132, %133 : vector<1x16xf32>
    %135 = vector.extract_strided_slice %97 {offsets = [0, 32], sizes = [1, 16], strides = [1, 1]} : vector<1x64xf32> to vector<1x16xf32>
    %136 = math.tanh %135 : vector<1x16xf32>
    %137 = vector.extract_strided_slice %97 {offsets = [0, 48], sizes = [1, 16], strides = [1, 1]} : vector<1x64xf32> to vector<1x16xf32>
    %138 = arith.negf %137 : vector<1x16xf32>
    %139 = math.exp %138 : vector<1x16xf32>
    %cst_48 = arith.constant 1.000000e+00 : f32
    %140 = vector.broadcast %cst_48 : f32 to vector<1x16xf32>
    %141 = arith.addf %140, %139 : vector<1x16xf32>
    %142 = arith.divf %140, %141 : vector<1x16xf32>
    %143 = arith.mulf %134, %82 : vector<1x16xf32>
    %144 = arith.mulf %128, %136 : vector<1x16xf32>
    %145 = arith.addf %143, %144 : vector<1x16xf32>
    %146 = math.tanh %145 : vector<1x16xf32>
    %147 = arith.mulf %142, %146 : vector<1x16xf32>
    %148 = arith.index_cast %c1_i32 : i32 to index
    %c0_49 = arith.constant 0 : index
    %149 = vector.load %arg17[%148, %c0_49] : memref<8x16xf32, #tpu.memory_space<vmem>>, vector<1x16xf32>
    tpu.vector_store %arg17[%148, %c0_49], %122 {strides = array<i32>} : memref<8x16xf32, #tpu.memory_space<vmem>>, vector<1x16xf32>,
    %150 = arith.index_cast %89 : i32 to index
    %c0_50 = arith.constant 0 : index
    %151 = vector.load %arg18[%150, %c0_50] : memref<8x16xf32, #tpu.memory_space<vmem>>, vector<1x16xf32>
    tpu.vector_store %arg18[%150, %c0_50], %147 {strides = array<i32>} : memref<8x16xf32, #tpu.memory_space<vmem>>, vector<1x16xf32>,
    %c2_i32 = arith.constant 2 : i32
    %c7_i32_51 = arith.constant 7 : i32
    %152 = arith.subi %c7_i32_51, %c2_i32 : i32
    %153 = arith.index_cast %c2_i32 : i32 to index
    %c0_52 = arith.constant 0 : index
    %154 = vector.load %arg15[%153, %c0_52] : memref<8x64xf32, #tpu.memory_space<vmem>>, vector<1x64xf32>
    %cst_53 = arith.constant dense<0.000000e+00> : vector<1x64xf32>
    %155 = tpu.matmul %122, %16, %cst_53 {dimension_numbers = #tpu.dot_dimension_numbers<[1], [0], [0], [1], [0, 0, 1, 1], [], []>} : vector<1x16xf32>, vector<16x64xf32>, vector<1x64xf32> -> vector<1x64xf32>
    %156 = arith.addf %154, %155 : vector<1x64xf32>
    %157 = arith.index_cast %152 : i32 to index
    %c0_54 = arith.constant 0 : index
    %158 = vector.load %arg16[%157, %c0_54] : memref<8x64xf32, #tpu.memory_space<vmem>>, vector<1x64xf32>
    %cst_55 = arith.constant dense<0.000000e+00> : vector<1x64xf32>
    %159 = tpu.matmul %147, %17, %cst_55 {dimension_numbers = #tpu.dot_dimension_numbers<[1], [0], [0], [1], [0, 0, 1, 1], [], []>} : vector<1x16xf32>, vector<16x64xf32>, vector<1x64xf32> -> vector<1x64xf32>
    %160 = arith.addf %158, %159 : vector<1x64xf32>
    %161 = vector.extract_strided_slice %156 {offsets = [0, 0], sizes = [1, 16], strides = [1, 1]} : vector<1x64xf32> to vector<1x16xf32>
    %162 = arith.negf %161 : vector<1x16xf32>
    %163 = math.exp %162 : vector<1x16xf32>
    %cst_56 = arith.constant 1.000000e+00 : f32
    %164 = vector.broadcast %cst_56 : f32 to vector<1x16xf32>
    %165 = arith.addf %164, %163 : vector<1x16xf32>
    %166 = arith.divf %164, %165 : vector<1x16xf32>
    %167 = vector.extract_strided_slice %156 {offsets = [0, 16], sizes = [1, 16], strides = [1, 1]} : vector<1x64xf32> to vector<1x16xf32>
    %168 = arith.negf %167 : vector<1x16xf32>
    %169 = math.exp %168 : vector<1x16xf32>
    %cst_57 = arith.constant 1.000000e+00 : f32
    %170 = vector.broadcast %cst_57 : f32 to vector<1x16xf32>
    %171 = arith.addf %170, %169 : vector<1x16xf32>
    %172 = arith.divf %170, %171 : vector<1x16xf32>
    %173 = vector.extract_strided_slice %156 {offsets = [0, 32], sizes = [1, 16], strides = [1, 1]} : vector<1x64xf32> to vector<1x16xf32>
    %174 = math.tanh %173 : vector<1x16xf32>
    %175 = vector.extract_strided_slice %156 {offsets = [0, 48], sizes = [1, 16], strides = [1, 1]} : vector<1x64xf32> to vector<1x16xf32>
    %176 = arith.negf %175 : vector<1x16xf32>
    %177 = math.exp %176 : vector<1x16xf32>
    %cst_58 = arith.constant 1.000000e+00 : f32
    %178 = vector.broadcast %cst_58 : f32 to vector<1x16xf32>
    %179 = arith.addf %178, %177 : vector<1x16xf32>
    %180 = arith.divf %178, %179 : vector<1x16xf32>
    %181 = arith.mulf %172, %120 : vector<1x16xf32>
    %182 = arith.mulf %166, %174 : vector<1x16xf32>
    %183 = arith.addf %181, %182 : vector<1x16xf32>
    %184 = math.tanh %183 : vector<1x16xf32>
    %185 = arith.mulf %180, %184 : vector<1x16xf32>
    %186 = vector.extract_strided_slice %160 {offsets = [0, 0], sizes = [1, 16], strides = [1, 1]} : vector<1x64xf32> to vector<1x16xf32>
    %187 = arith.negf %186 : vector<1x16xf32>
    %188 = math.exp %187 : vector<1x16xf32>
    %cst_59 = arith.constant 1.000000e+00 : f32
    %189 = vector.broadcast %cst_59 : f32 to vector<1x16xf32>
    %190 = arith.addf %189, %188 : vector<1x16xf32>
    %191 = arith.divf %189, %190 : vector<1x16xf32>
    %192 = vector.extract_strided_slice %160 {offsets = [0, 16], sizes = [1, 16], strides = [1, 1]} : vector<1x64xf32> to vector<1x16xf32>
    %193 = arith.negf %192 : vector<1x16xf32>
    %194 = math.exp %193 : vector<1x16xf32>
    %cst_60 = arith.constant 1.000000e+00 : f32
    %195 = vector.broadcast %cst_60 : f32 to vector<1x16xf32>
    %196 = arith.addf %195, %194 : vector<1x16xf32>
    %197 = arith.divf %195, %196 : vector<1x16xf32>
    %198 = vector.extract_strided_slice %160 {offsets = [0, 32], sizes = [1, 16], strides = [1, 1]} : vector<1x64xf32> to vector<1x16xf32>
    %199 = math.tanh %198 : vector<1x16xf32>
    %200 = vector.extract_strided_slice %160 {offsets = [0, 48], sizes = [1, 16], strides = [1, 1]} : vector<1x64xf32> to vector<1x16xf32>
    %201 = arith.negf %200 : vector<1x16xf32>
    %202 = math.exp %201 : vector<1x16xf32>
    %cst_61 = arith.constant 1.000000e+00 : f32
    %203 = vector.broadcast %cst_61 : f32 to vector<1x16xf32>
    %204 = arith.addf %203, %202 : vector<1x16xf32>
    %205 = arith.divf %203, %204 : vector<1x16xf32>
    %206 = arith.mulf %197, %145 : vector<1x16xf32>
    %207 = arith.mulf %191, %199 : vector<1x16xf32>
    %208 = arith.addf %206, %207 : vector<1x16xf32>
    %209 = math.tanh %208 : vector<1x16xf32>
    %210 = arith.mulf %205, %209 : vector<1x16xf32>
    %211 = arith.index_cast %c2_i32 : i32 to index
    %c0_62 = arith.constant 0 : index
    %212 = vector.load %arg17[%211, %c0_62] : memref<8x16xf32, #tpu.memory_space<vmem>>, vector<1x16xf32>
    tpu.vector_store %arg17[%211, %c0_62], %185 {strides = array<i32>} : memref<8x16xf32, #tpu.memory_space<vmem>>, vector<1x16xf32>,
    %213 = arith.index_cast %152 : i32 to index
    %c0_63 = arith.constant 0 : index
    %214 = vector.load %arg18[%213, %c0_63] : memref<8x16xf32, #tpu.memory_space<vmem>>, vector<1x16xf32>
    tpu.vector_store %arg18[%213, %c0_63], %210 {strides = array<i32>} : memref<8x16xf32, #tpu.memory_space<vmem>>, vector<1x16xf32>,
    %c3_i32 = arith.constant 3 : i32
    %c7_i32_64 = arith.constant 7 : i32
    %215 = arith.subi %c7_i32_64, %c3_i32 : i32
    %216 = arith.index_cast %c3_i32 : i32 to index
    %c0_65 = arith.constant 0 : index
    %217 = vector.load %arg15[%216, %c0_65] : memref<8x64xf32, #tpu.memory_space<vmem>>, vector<1x64xf32>
    %cst_66 = arith.constant dense<0.000000e+00> : vector<1x64xf32>
    %218 = tpu.matmul %185, %16, %cst_66 {dimension_numbers = #tpu.dot_dimension_numbers<[1], [0], [0], [1], [0, 0, 1, 1], [], []>} : vector<1x16xf32>, vector<16x64xf32>, vector<1x64xf32> -> vector<1x64xf32>
    %219 = arith.addf %217, %218 : vector<1x64xf32>
    %220 = arith.index_cast %215 : i32 to index
    %c0_67 = arith.constant 0 : index
    %221 = vector.load %arg16[%220, %c0_67] : memref<8x64xf32, #tpu.memory_space<vmem>>, vector<1x64xf32>
    %cst_68 = arith.constant dense<0.000000e+00> : vector<1x64xf32>
    %222 = tpu.matmul %210, %17, %cst_68 {dimension_numbers = #tpu.dot_dimension_numbers<[1], [0], [0], [1], [0, 0, 1, 1], [], []>} : vector<1x16xf32>, vector<16x64xf32>, vector<1x64xf32> -> vector<1x64xf32>
    %223 = arith.addf %221, %222 : vector<1x64xf32>
    %224 = vector.extract_strided_slice %219 {offsets = [0, 0], sizes = [1, 16], strides = [1, 1]} : vector<1x64xf32> to vector<1x16xf32>
    %225 = arith.negf %224 : vector<1x16xf32>
    %226 = math.exp %225 : vector<1x16xf32>
    %cst_69 = arith.constant 1.000000e+00 : f32
    %227 = vector.broadcast %cst_69 : f32 to vector<1x16xf32>
    %228 = arith.addf %227, %226 : vector<1x16xf32>
    %229 = arith.divf %227, %228 : vector<1x16xf32>
    %230 = vector.extract_strided_slice %219 {offsets = [0, 16], sizes = [1, 16], strides = [1, 1]} : vector<1x64xf32> to vector<1x16xf32>
    %231 = arith.negf %230 : vector<1x16xf32>
    %232 = math.exp %231 : vector<1x16xf32>
    %cst_70 = arith.constant 1.000000e+00 : f32
    %233 = vector.broadcast %cst_70 : f32 to vector<1x16xf32>
    %234 = arith.addf %233, %232 : vector<1x16xf32>
    %235 = arith.divf %233, %234 : vector<1x16xf32>
    %236 = vector.extract_strided_slice %219 {offsets = [0, 32], sizes = [1, 16], strides = [1, 1]} : vector<1x64xf32> to vector<1x16xf32>
    %237 = math.tanh %236 : vector<1x16xf32>
    %238 = vector.extract_strided_slice %219 {offsets = [0, 48], sizes = [1, 16], strides = [1, 1]} : vector<1x64xf32> to vector<1x16xf32>
    %239 = arith.negf %238 : vector<1x16xf32>
    %240 = math.exp %239 : vector<1x16xf32>
    %cst_71 = arith.constant 1.000000e+00 : f32
    %241 = vector.broadcast %cst_71 : f32 to vector<1x16xf32>
    %242 = arith.addf %241, %240 : vector<1x16xf32>
    %243 = arith.divf %241, %242 : vector<1x16xf32>
    %244 = arith.mulf %235, %183 : vector<1x16xf32>
    %245 = arith.mulf %229, %237 : vector<1x16xf32>
    %246 = arith.addf %244, %245 : vector<1x16xf32>
    %247 = math.tanh %246 : vector<1x16xf32>
    %248 = arith.mulf %243, %247 : vector<1x16xf32>
    %249 = vector.extract_strided_slice %223 {offsets = [0, 0], sizes = [1, 16], strides = [1, 1]} : vector<1x64xf32> to vector<1x16xf32>
    %250 = arith.negf %249 : vector<1x16xf32>
    %251 = math.exp %250 : vector<1x16xf32>
    %cst_72 = arith.constant 1.000000e+00 : f32
    %252 = vector.broadcast %cst_72 : f32 to vector<1x16xf32>
    %253 = arith.addf %252, %251 : vector<1x16xf32>
    %254 = arith.divf %252, %253 : vector<1x16xf32>
    %255 = vector.extract_strided_slice %223 {offsets = [0, 16], sizes = [1, 16], strides = [1, 1]} : vector<1x64xf32> to vector<1x16xf32>
    %256 = arith.negf %255 : vector<1x16xf32>
    %257 = math.exp %256 : vector<1x16xf32>
    %cst_73 = arith.constant 1.000000e+00 : f32
    %258 = vector.broadcast %cst_73 : f32 to vector<1x16xf32>
    %259 = arith.addf %258, %257 : vector<1x16xf32>
    %260 = arith.divf %258, %259 : vector<1x16xf32>
    %261 = vector.extract_strided_slice %223 {offsets = [0, 32], sizes = [1, 16], strides = [1, 1]} : vector<1x64xf32> to vector<1x16xf32>
    %262 = math.tanh %261 : vector<1x16xf32>
    %263 = vector.extract_strided_slice %223 {offsets = [0, 48], sizes = [1, 16], strides = [1, 1]} : vector<1x64xf32> to vector<1x16xf32>
    %264 = arith.negf %263 : vector<1x16xf32>
    %265 = math.exp %264 : vector<1x16xf32>
    %cst_74 = arith.constant 1.000000e+00 : f32
    %266 = vector.broadcast %cst_74 : f32 to vector<1x16xf32>
    %267 = arith.addf %266, %265 : vector<1x16xf32>
    %268 = arith.divf %266, %267 : vector<1x16xf32>
    %269 = arith.mulf %260, %208 : vector<1x16xf32>
    %270 = arith.mulf %254, %262 : vector<1x16xf32>
    %271 = arith.addf %269, %270 : vector<1x16xf32>
    %272 = math.tanh %271 : vector<1x16xf32>
    %273 = arith.mulf %268, %272 : vector<1x16xf32>
    %274 = arith.index_cast %c3_i32 : i32 to index
    %c0_75 = arith.constant 0 : index
    %275 = vector.load %arg17[%274, %c0_75] : memref<8x16xf32, #tpu.memory_space<vmem>>, vector<1x16xf32>
    tpu.vector_store %arg17[%274, %c0_75], %248 {strides = array<i32>} : memref<8x16xf32, #tpu.memory_space<vmem>>, vector<1x16xf32>,
    %276 = arith.index_cast %215 : i32 to index
    %c0_76 = arith.constant 0 : index
    %277 = vector.load %arg18[%276, %c0_76] : memref<8x16xf32, #tpu.memory_space<vmem>>, vector<1x16xf32>
    tpu.vector_store %arg18[%276, %c0_76], %273 {strides = array<i32>} : memref<8x16xf32, #tpu.memory_space<vmem>>, vector<1x16xf32>,
    %c4_i32 = arith.constant 4 : i32
    %c7_i32_77 = arith.constant 7 : i32
    %278 = arith.subi %c7_i32_77, %c4_i32 : i32
    %279 = arith.index_cast %c4_i32 : i32 to index
    %c0_78 = arith.constant 0 : index
    %280 = vector.load %arg15[%279, %c0_78] : memref<8x64xf32, #tpu.memory_space<vmem>>, vector<1x64xf32>
    %cst_79 = arith.constant dense<0.000000e+00> : vector<1x64xf32>
    %281 = tpu.matmul %248, %16, %cst_79 {dimension_numbers = #tpu.dot_dimension_numbers<[1], [0], [0], [1], [0, 0, 1, 1], [], []>} : vector<1x16xf32>, vector<16x64xf32>, vector<1x64xf32> -> vector<1x64xf32>
    %282 = arith.addf %280, %281 : vector<1x64xf32>
    %283 = arith.index_cast %278 : i32 to index
    %c0_80 = arith.constant 0 : index
    %284 = vector.load %arg16[%283, %c0_80] : memref<8x64xf32, #tpu.memory_space<vmem>>, vector<1x64xf32>
    %cst_81 = arith.constant dense<0.000000e+00> : vector<1x64xf32>
    %285 = tpu.matmul %273, %17, %cst_81 {dimension_numbers = #tpu.dot_dimension_numbers<[1], [0], [0], [1], [0, 0, 1, 1], [], []>} : vector<1x16xf32>, vector<16x64xf32>, vector<1x64xf32> -> vector<1x64xf32>
    %286 = arith.addf %284, %285 : vector<1x64xf32>
    %287 = vector.extract_strided_slice %282 {offsets = [0, 0], sizes = [1, 16], strides = [1, 1]} : vector<1x64xf32> to vector<1x16xf32>
    %288 = arith.negf %287 : vector<1x16xf32>
    %289 = math.exp %288 : vector<1x16xf32>
    %cst_82 = arith.constant 1.000000e+00 : f32
    %290 = vector.broadcast %cst_82 : f32 to vector<1x16xf32>
    %291 = arith.addf %290, %289 : vector<1x16xf32>
    %292 = arith.divf %290, %291 : vector<1x16xf32>
    %293 = vector.extract_strided_slice %282 {offsets = [0, 16], sizes = [1, 16], strides = [1, 1]} : vector<1x64xf32> to vector<1x16xf32>
    %294 = arith.negf %293 : vector<1x16xf32>
    %295 = math.exp %294 : vector<1x16xf32>
    %cst_83 = arith.constant 1.000000e+00 : f32
    %296 = vector.broadcast %cst_83 : f32 to vector<1x16xf32>
    %297 = arith.addf %296, %295 : vector<1x16xf32>
    %298 = arith.divf %296, %297 : vector<1x16xf32>
    %299 = vector.extract_strided_slice %282 {offsets = [0, 32], sizes = [1, 16], strides = [1, 1]} : vector<1x64xf32> to vector<1x16xf32>
    %300 = math.tanh %299 : vector<1x16xf32>
    %301 = vector.extract_strided_slice %282 {offsets = [0, 48], sizes = [1, 16], strides = [1, 1]} : vector<1x64xf32> to vector<1x16xf32>
    %302 = arith.negf %301 : vector<1x16xf32>
    %303 = math.exp %302 : vector<1x16xf32>
    %cst_84 = arith.constant 1.000000e+00 : f32
    %304 = vector.broadcast %cst_84 : f32 to vector<1x16xf32>
    %305 = arith.addf %304, %303 : vector<1x16xf32>
    %306 = arith.divf %304, %305 : vector<1x16xf32>
    %307 = arith.mulf %298, %246 : vector<1x16xf32>
    %308 = arith.mulf %292, %300 : vector<1x16xf32>
    %309 = arith.addf %307, %308 : vector<1x16xf32>
    %310 = math.tanh %309 : vector<1x16xf32>
    %311 = arith.mulf %306, %310 : vector<1x16xf32>
    %312 = vector.extract_strided_slice %286 {offsets = [0, 0], sizes = [1, 16], strides = [1, 1]} : vector<1x64xf32> to vector<1x16xf32>
    %313 = arith.negf %312 : vector<1x16xf32>
    %314 = math.exp %313 : vector<1x16xf32>
    %cst_85 = arith.constant 1.000000e+00 : f32
    %315 = vector.broadcast %cst_85 : f32 to vector<1x16xf32>
    %316 = arith.addf %315, %314 : vector<1x16xf32>
    %317 = arith.divf %315, %316 : vector<1x16xf32>
    %318 = vector.extract_strided_slice %286 {offsets = [0, 16], sizes = [1, 16], strides = [1, 1]} : vector<1x64xf32> to vector<1x16xf32>
    %319 = arith.negf %318 : vector<1x16xf32>
    %320 = math.exp %319 : vector<1x16xf32>
    %cst_86 = arith.constant 1.000000e+00 : f32
    %321 = vector.broadcast %cst_86 : f32 to vector<1x16xf32>
    %322 = arith.addf %321, %320 : vector<1x16xf32>
    %323 = arith.divf %321, %322 : vector<1x16xf32>
    %324 = vector.extract_strided_slice %286 {offsets = [0, 32], sizes = [1, 16], strides = [1, 1]} : vector<1x64xf32> to vector<1x16xf32>
    %325 = math.tanh %324 : vector<1x16xf32>
    %326 = vector.extract_strided_slice %286 {offsets = [0, 48], sizes = [1, 16], strides = [1, 1]} : vector<1x64xf32> to vector<1x16xf32>
    %327 = arith.negf %326 : vector<1x16xf32>
    %328 = math.exp %327 : vector<1x16xf32>
    %cst_87 = arith.constant 1.000000e+00 : f32
    %329 = vector.broadcast %cst_87 : f32 to vector<1x16xf32>
    %330 = arith.addf %329, %328 : vector<1x16xf32>
    %331 = arith.divf %329, %330 : vector<1x16xf32>
    %332 = arith.mulf %323, %271 : vector<1x16xf32>
    %333 = arith.mulf %317, %325 : vector<1x16xf32>
    %334 = arith.addf %332, %333 : vector<1x16xf32>
    %335 = math.tanh %334 : vector<1x16xf32>
    %336 = arith.mulf %331, %335 : vector<1x16xf32>
    %337 = arith.index_cast %c4_i32 : i32 to index
    %c0_88 = arith.constant 0 : index
    %338 = vector.load %arg17[%337, %c0_88] : memref<8x16xf32, #tpu.memory_space<vmem>>, vector<1x16xf32>
    tpu.vector_store %arg17[%337, %c0_88], %311 {strides = array<i32>} : memref<8x16xf32, #tpu.memory_space<vmem>>, vector<1x16xf32>,
    %339 = arith.index_cast %278 : i32 to index
    %c0_89 = arith.constant 0 : index
    %340 = vector.load %arg18[%339, %c0_89] : memref<8x16xf32, #tpu.memory_space<vmem>>, vector<1x16xf32>
    tpu.vector_store %arg18[%339, %c0_89], %336 {strides = array<i32>} : memref<8x16xf32, #tpu.memory_space<vmem>>, vector<1x16xf32>,
    %c5_i32 = arith.constant 5 : i32
    %c7_i32_90 = arith.constant 7 : i32
    %341 = arith.subi %c7_i32_90, %c5_i32 : i32
    %342 = arith.index_cast %c5_i32 : i32 to index
    %c0_91 = arith.constant 0 : index
    %343 = vector.load %arg15[%342, %c0_91] : memref<8x64xf32, #tpu.memory_space<vmem>>, vector<1x64xf32>
    %cst_92 = arith.constant dense<0.000000e+00> : vector<1x64xf32>
    %344 = tpu.matmul %311, %16, %cst_92 {dimension_numbers = #tpu.dot_dimension_numbers<[1], [0], [0], [1], [0, 0, 1, 1], [], []>} : vector<1x16xf32>, vector<16x64xf32>, vector<1x64xf32> -> vector<1x64xf32>
    %345 = arith.addf %343, %344 : vector<1x64xf32>
    %346 = arith.index_cast %341 : i32 to index
    %c0_93 = arith.constant 0 : index
    %347 = vector.load %arg16[%346, %c0_93] : memref<8x64xf32, #tpu.memory_space<vmem>>, vector<1x64xf32>
    %cst_94 = arith.constant dense<0.000000e+00> : vector<1x64xf32>
    %348 = tpu.matmul %336, %17, %cst_94 {dimension_numbers = #tpu.dot_dimension_numbers<[1], [0], [0], [1], [0, 0, 1, 1], [], []>} : vector<1x16xf32>, vector<16x64xf32>, vector<1x64xf32> -> vector<1x64xf32>
    %349 = arith.addf %347, %348 : vector<1x64xf32>
    %350 = vector.extract_strided_slice %345 {offsets = [0, 0], sizes = [1, 16], strides = [1, 1]} : vector<1x64xf32> to vector<1x16xf32>
    %351 = arith.negf %350 : vector<1x16xf32>
    %352 = math.exp %351 : vector<1x16xf32>
    %cst_95 = arith.constant 1.000000e+00 : f32
    %353 = vector.broadcast %cst_95 : f32 to vector<1x16xf32>
    %354 = arith.addf %353, %352 : vector<1x16xf32>
    %355 = arith.divf %353, %354 : vector<1x16xf32>
    %356 = vector.extract_strided_slice %345 {offsets = [0, 16], sizes = [1, 16], strides = [1, 1]} : vector<1x64xf32> to vector<1x16xf32>
    %357 = arith.negf %356 : vector<1x16xf32>
    %358 = math.exp %357 : vector<1x16xf32>
    %cst_96 = arith.constant 1.000000e+00 : f32
    %359 = vector.broadcast %cst_96 : f32 to vector<1x16xf32>
    %360 = arith.addf %359, %358 : vector<1x16xf32>
    %361 = arith.divf %359, %360 : vector<1x16xf32>
    %362 = vector.extract_strided_slice %345 {offsets = [0, 32], sizes = [1, 16], strides = [1, 1]} : vector<1x64xf32> to vector<1x16xf32>
    %363 = math.tanh %362 : vector<1x16xf32>
    %364 = vector.extract_strided_slice %345 {offsets = [0, 48], sizes = [1, 16], strides = [1, 1]} : vector<1x64xf32> to vector<1x16xf32>
    %365 = arith.negf %364 : vector<1x16xf32>
    %366 = math.exp %365 : vector<1x16xf32>
    %cst_97 = arith.constant 1.000000e+00 : f32
    %367 = vector.broadcast %cst_97 : f32 to vector<1x16xf32>
    %368 = arith.addf %367, %366 : vector<1x16xf32>
    %369 = arith.divf %367, %368 : vector<1x16xf32>
    %370 = arith.mulf %361, %309 : vector<1x16xf32>
    %371 = arith.mulf %355, %363 : vector<1x16xf32>
    %372 = arith.addf %370, %371 : vector<1x16xf32>
    %373 = math.tanh %372 : vector<1x16xf32>
    %374 = arith.mulf %369, %373 : vector<1x16xf32>
    %375 = vector.extract_strided_slice %349 {offsets = [0, 0], sizes = [1, 16], strides = [1, 1]} : vector<1x64xf32> to vector<1x16xf32>
    %376 = arith.negf %375 : vector<1x16xf32>
    %377 = math.exp %376 : vector<1x16xf32>
    %cst_98 = arith.constant 1.000000e+00 : f32
    %378 = vector.broadcast %cst_98 : f32 to vector<1x16xf32>
    %379 = arith.addf %378, %377 : vector<1x16xf32>
    %380 = arith.divf %378, %379 : vector<1x16xf32>
    %381 = vector.extract_strided_slice %349 {offsets = [0, 16], sizes = [1, 16], strides = [1, 1]} : vector<1x64xf32> to vector<1x16xf32>
    %382 = arith.negf %381 : vector<1x16xf32>
    %383 = math.exp %382 : vector<1x16xf32>
    %cst_99 = arith.constant 1.000000e+00 : f32
    %384 = vector.broadcast %cst_99 : f32 to vector<1x16xf32>
    %385 = arith.addf %384, %383 : vector<1x16xf32>
    %386 = arith.divf %384, %385 : vector<1x16xf32>
    %387 = vector.extract_strided_slice %349 {offsets = [0, 32], sizes = [1, 16], strides = [1, 1]} : vector<1x64xf32> to vector<1x16xf32>
    %388 = math.tanh %387 : vector<1x16xf32>
    %389 = vector.extract_strided_slice %349 {offsets = [0, 48], sizes = [1, 16], strides = [1, 1]} : vector<1x64xf32> to vector<1x16xf32>
    %390 = arith.negf %389 : vector<1x16xf32>
    %391 = math.exp %390 : vector<1x16xf32>
    %cst_100 = arith.constant 1.000000e+00 : f32
    %392 = vector.broadcast %cst_100 : f32 to vector<1x16xf32>
    %393 = arith.addf %392, %391 : vector<1x16xf32>
    %394 = arith.divf %392, %393 : vector<1x16xf32>
    %395 = arith.mulf %386, %334 : vector<1x16xf32>
    %396 = arith.mulf %380, %388 : vector<1x16xf32>
    %397 = arith.addf %395, %396 : vector<1x16xf32>
    %398 = math.tanh %397 : vector<1x16xf32>
    %399 = arith.mulf %394, %398 : vector<1x16xf32>
    %400 = arith.index_cast %c5_i32 : i32 to index
    %c0_101 = arith.constant 0 : index
    %401 = vector.load %arg17[%400, %c0_101] : memref<8x16xf32, #tpu.memory_space<vmem>>, vector<1x16xf32>
    tpu.vector_store %arg17[%400, %c0_101], %374 {strides = array<i32>} : memref<8x16xf32, #tpu.memory_space<vmem>>, vector<1x16xf32>,
    %402 = arith.index_cast %341 : i32 to index
    %c0_102 = arith.constant 0 : index
    %403 = vector.load %arg18[%402, %c0_102] : memref<8x16xf32, #tpu.memory_space<vmem>>, vector<1x16xf32>
    tpu.vector_store %arg18[%402, %c0_102], %399 {strides = array<i32>} : memref<8x16xf32, #tpu.memory_space<vmem>>, vector<1x16xf32>,
    %c6_i32 = arith.constant 6 : i32
    %c7_i32_103 = arith.constant 7 : i32
    %404 = arith.subi %c7_i32_103, %c6_i32 : i32
    %405 = arith.index_cast %c6_i32 : i32 to index
    %c0_104 = arith.constant 0 : index
    %406 = vector.load %arg15[%405, %c0_104] : memref<8x64xf32, #tpu.memory_space<vmem>>, vector<1x64xf32>
    %cst_105 = arith.constant dense<0.000000e+00> : vector<1x64xf32>
    %407 = tpu.matmul %374, %16, %cst_105 {dimension_numbers = #tpu.dot_dimension_numbers<[1], [0], [0], [1], [0, 0, 1, 1], [], []>} : vector<1x16xf32>, vector<16x64xf32>, vector<1x64xf32> -> vector<1x64xf32>
    %408 = arith.addf %406, %407 : vector<1x64xf32>
    %409 = arith.index_cast %404 : i32 to index
    %c0_106 = arith.constant 0 : index
    %410 = vector.load %arg16[%409, %c0_106] : memref<8x64xf32, #tpu.memory_space<vmem>>, vector<1x64xf32>
    %cst_107 = arith.constant dense<0.000000e+00> : vector<1x64xf32>
    %411 = tpu.matmul %399, %17, %cst_107 {dimension_numbers = #tpu.dot_dimension_numbers<[1], [0], [0], [1], [0, 0, 1, 1], [], []>} : vector<1x16xf32>, vector<16x64xf32>, vector<1x64xf32> -> vector<1x64xf32>
    %412 = arith.addf %410, %411 : vector<1x64xf32>
    %413 = vector.extract_strided_slice %408 {offsets = [0, 0], sizes = [1, 16], strides = [1, 1]} : vector<1x64xf32> to vector<1x16xf32>
    %414 = arith.negf %413 : vector<1x16xf32>
    %415 = math.exp %414 : vector<1x16xf32>
    %cst_108 = arith.constant 1.000000e+00 : f32
    %416 = vector.broadcast %cst_108 : f32 to vector<1x16xf32>
    %417 = arith.addf %416, %415 : vector<1x16xf32>
    %418 = arith.divf %416, %417 : vector<1x16xf32>
    %419 = vector.extract_strided_slice %408 {offsets = [0, 16], sizes = [1, 16], strides = [1, 1]} : vector<1x64xf32> to vector<1x16xf32>
    %420 = arith.negf %419 : vector<1x16xf32>
    %421 = math.exp %420 : vector<1x16xf32>
    %cst_109 = arith.constant 1.000000e+00 : f32
    %422 = vector.broadcast %cst_109 : f32 to vector<1x16xf32>
    %423 = arith.addf %422, %421 : vector<1x16xf32>
    %424 = arith.divf %422, %423 : vector<1x16xf32>
    %425 = vector.extract_strided_slice %408 {offsets = [0, 32], sizes = [1, 16], strides = [1, 1]} : vector<1x64xf32> to vector<1x16xf32>
    %426 = math.tanh %425 : vector<1x16xf32>
    %427 = vector.extract_strided_slice %408 {offsets = [0, 48], sizes = [1, 16], strides = [1, 1]} : vector<1x64xf32> to vector<1x16xf32>
    %428 = arith.negf %427 : vector<1x16xf32>
    %429 = math.exp %428 : vector<1x16xf32>
    %cst_110 = arith.constant 1.000000e+00 : f32
    %430 = vector.broadcast %cst_110 : f32 to vector<1x16xf32>
    %431 = arith.addf %430, %429 : vector<1x16xf32>
    %432 = arith.divf %430, %431 : vector<1x16xf32>
    %433 = arith.mulf %424, %372 : vector<1x16xf32>
    %434 = arith.mulf %418, %426 : vector<1x16xf32>
    %435 = arith.addf %433, %434 : vector<1x16xf32>
    %436 = math.tanh %435 : vector<1x16xf32>
    %437 = arith.mulf %432, %436 : vector<1x16xf32>
    %438 = vector.extract_strided_slice %412 {offsets = [0, 0], sizes = [1, 16], strides = [1, 1]} : vector<1x64xf32> to vector<1x16xf32>
    %439 = arith.negf %438 : vector<1x16xf32>
    %440 = math.exp %439 : vector<1x16xf32>
    %cst_111 = arith.constant 1.000000e+00 : f32
    %441 = vector.broadcast %cst_111 : f32 to vector<1x16xf32>
    %442 = arith.addf %441, %440 : vector<1x16xf32>
    %443 = arith.divf %441, %442 : vector<1x16xf32>
    %444 = vector.extract_strided_slice %412 {offsets = [0, 16], sizes = [1, 16], strides = [1, 1]} : vector<1x64xf32> to vector<1x16xf32>
    %445 = arith.negf %444 : vector<1x16xf32>
    %446 = math.exp %445 : vector<1x16xf32>
    %cst_112 = arith.constant 1.000000e+00 : f32
    %447 = vector.broadcast %cst_112 : f32 to vector<1x16xf32>
    %448 = arith.addf %447, %446 : vector<1x16xf32>
    %449 = arith.divf %447, %448 : vector<1x16xf32>
    %450 = vector.extract_strided_slice %412 {offsets = [0, 32], sizes = [1, 16], strides = [1, 1]} : vector<1x64xf32> to vector<1x16xf32>
    %451 = math.tanh %450 : vector<1x16xf32>
    %452 = vector.extract_strided_slice %412 {offsets = [0, 48], sizes = [1, 16], strides = [1, 1]} : vector<1x64xf32> to vector<1x16xf32>
    %453 = arith.negf %452 : vector<1x16xf32>
    %454 = math.exp %453 : vector<1x16xf32>
    %cst_113 = arith.constant 1.000000e+00 : f32
    %455 = vector.broadcast %cst_113 : f32 to vector<1x16xf32>
    %456 = arith.addf %455, %454 : vector<1x16xf32>
    %457 = arith.divf %455, %456 : vector<1x16xf32>
    %458 = arith.mulf %449, %397 : vector<1x16xf32>
    %459 = arith.mulf %443, %451 : vector<1x16xf32>
    %460 = arith.addf %458, %459 : vector<1x16xf32>
    %461 = math.tanh %460 : vector<1x16xf32>
    %462 = arith.mulf %457, %461 : vector<1x16xf32>
    %463 = arith.index_cast %c6_i32 : i32 to index
    %c0_114 = arith.constant 0 : index
    %464 = vector.load %arg17[%463, %c0_114] : memref<8x16xf32, #tpu.memory_space<vmem>>, vector<1x16xf32>
    tpu.vector_store %arg17[%463, %c0_114], %437 {strides = array<i32>} : memref<8x16xf32, #tpu.memory_space<vmem>>, vector<1x16xf32>,
    %465 = arith.index_cast %404 : i32 to index
    %c0_115 = arith.constant 0 : index
    %466 = vector.load %arg18[%465, %c0_115] : memref<8x16xf32, #tpu.memory_space<vmem>>, vector<1x16xf32>
    tpu.vector_store %arg18[%465, %c0_115], %462 {strides = array<i32>} : memref<8x16xf32, #tpu.memory_space<vmem>>, vector<1x16xf32>,
    %c7_i32_116 = arith.constant 7 : i32
    %c7_i32_117 = arith.constant 7 : i32
    %467 = arith.subi %c7_i32_117, %c7_i32_116 : i32
    %468 = arith.index_cast %c7_i32_116 : i32 to index
    %c0_118 = arith.constant 0 : index
    %469 = vector.load %arg15[%468, %c0_118] : memref<8x64xf32, #tpu.memory_space<vmem>>, vector<1x64xf32>
    %cst_119 = arith.constant dense<0.000000e+00> : vector<1x64xf32>
    %470 = tpu.matmul %437, %16, %cst_119 {dimension_numbers = #tpu.dot_dimension_numbers<[1], [0], [0], [1], [0, 0, 1, 1], [], []>} : vector<1x16xf32>, vector<16x64xf32>, vector<1x64xf32> -> vector<1x64xf32>
    %471 = arith.addf %469, %470 : vector<1x64xf32>
    %472 = arith.index_cast %467 : i32 to index
    %c0_120 = arith.constant 0 : index
    %473 = vector.load %arg16[%472, %c0_120] : memref<8x64xf32, #tpu.memory_space<vmem>>, vector<1x64xf32>
    %cst_121 = arith.constant dense<0.000000e+00> : vector<1x64xf32>
    %474 = tpu.matmul %462, %17, %cst_121 {dimension_numbers = #tpu.dot_dimension_numbers<[1], [0], [0], [1], [0, 0, 1, 1], [], []>} : vector<1x16xf32>, vector<16x64xf32>, vector<1x64xf32> -> vector<1x64xf32>
    %475 = arith.addf %473, %474 : vector<1x64xf32>
    %476 = vector.extract_strided_slice %471 {offsets = [0, 0], sizes = [1, 16], strides = [1, 1]} : vector<1x64xf32> to vector<1x16xf32>
    %477 = arith.negf %476 : vector<1x16xf32>
    %478 = math.exp %477 : vector<1x16xf32>
    %cst_122 = arith.constant 1.000000e+00 : f32
    %479 = vector.broadcast %cst_122 : f32 to vector<1x16xf32>
    %480 = arith.addf %479, %478 : vector<1x16xf32>
    %481 = arith.divf %479, %480 : vector<1x16xf32>
    %482 = vector.extract_strided_slice %471 {offsets = [0, 16], sizes = [1, 16], strides = [1, 1]} : vector<1x64xf32> to vector<1x16xf32>
    %483 = arith.negf %482 : vector<1x16xf32>
    %484 = math.exp %483 : vector<1x16xf32>
    %cst_123 = arith.constant 1.000000e+00 : f32
    %485 = vector.broadcast %cst_123 : f32 to vector<1x16xf32>
    %486 = arith.addf %485, %484 : vector<1x16xf32>
    %487 = arith.divf %485, %486 : vector<1x16xf32>
    %488 = vector.extract_strided_slice %471 {offsets = [0, 32], sizes = [1, 16], strides = [1, 1]} : vector<1x64xf32> to vector<1x16xf32>
    %489 = math.tanh %488 : vector<1x16xf32>
    %490 = vector.extract_strided_slice %471 {offsets = [0, 48], sizes = [1, 16], strides = [1, 1]} : vector<1x64xf32> to vector<1x16xf32>
    %491 = arith.negf %490 : vector<1x16xf32>
    %492 = math.exp %491 : vector<1x16xf32>
    %cst_124 = arith.constant 1.000000e+00 : f32
    %493 = vector.broadcast %cst_124 : f32 to vector<1x16xf32>
    %494 = arith.addf %493, %492 : vector<1x16xf32>
    %495 = arith.divf %493, %494 : vector<1x16xf32>
    %496 = arith.mulf %487, %435 : vector<1x16xf32>
    %497 = arith.mulf %481, %489 : vector<1x16xf32>
    %498 = arith.addf %496, %497 : vector<1x16xf32>
    %499 = math.tanh %498 : vector<1x16xf32>
    %500 = arith.mulf %495, %499 : vector<1x16xf32>
    %501 = vector.extract_strided_slice %475 {offsets = [0, 0], sizes = [1, 16], strides = [1, 1]} : vector<1x64xf32> to vector<1x16xf32>
    %502 = arith.negf %501 : vector<1x16xf32>
    %503 = math.exp %502 : vector<1x16xf32>
    %cst_125 = arith.constant 1.000000e+00 : f32
    %504 = vector.broadcast %cst_125 : f32 to vector<1x16xf32>
    %505 = arith.addf %504, %503 : vector<1x16xf32>
    %506 = arith.divf %504, %505 : vector<1x16xf32>
    %507 = vector.extract_strided_slice %475 {offsets = [0, 16], sizes = [1, 16], strides = [1, 1]} : vector<1x64xf32> to vector<1x16xf32>
    %508 = arith.negf %507 : vector<1x16xf32>
    %509 = math.exp %508 : vector<1x16xf32>
    %cst_126 = arith.constant 1.000000e+00 : f32
    %510 = vector.broadcast %cst_126 : f32 to vector<1x16xf32>
    %511 = arith.addf %510, %509 : vector<1x16xf32>
    %512 = arith.divf %510, %511 : vector<1x16xf32>
    %513 = vector.extract_strided_slice %475 {offsets = [0, 32], sizes = [1, 16], strides = [1, 1]} : vector<1x64xf32> to vector<1x16xf32>
    %514 = math.tanh %513 : vector<1x16xf32>
    %515 = vector.extract_strided_slice %475 {offsets = [0, 48], sizes = [1, 16], strides = [1, 1]} : vector<1x64xf32> to vector<1x16xf32>
    %516 = arith.negf %515 : vector<1x16xf32>
    %517 = math.exp %516 : vector<1x16xf32>
    %cst_127 = arith.constant 1.000000e+00 : f32
    %518 = vector.broadcast %cst_127 : f32 to vector<1x16xf32>
    %519 = arith.addf %518, %517 : vector<1x16xf32>
    %520 = arith.divf %518, %519 : vector<1x16xf32>
    %521 = arith.mulf %512, %460 : vector<1x16xf32>
    %522 = arith.mulf %506, %514 : vector<1x16xf32>
    %523 = arith.addf %521, %522 : vector<1x16xf32>
    %524 = math.tanh %523 : vector<1x16xf32>
    %525 = arith.mulf %520, %524 : vector<1x16xf32>
    %526 = arith.index_cast %c7_i32_116 : i32 to index
    %c0_128 = arith.constant 0 : index
    %527 = vector.load %arg17[%526, %c0_128] : memref<8x16xf32, #tpu.memory_space<vmem>>, vector<1x16xf32>
    tpu.vector_store %arg17[%526, %c0_128], %500 {strides = array<i32>} : memref<8x16xf32, #tpu.memory_space<vmem>>, vector<1x16xf32>,
    %528 = arith.index_cast %467 : i32 to index
    %c0_129 = arith.constant 0 : index
    %529 = vector.load %arg18[%528, %c0_129] : memref<8x16xf32, #tpu.memory_space<vmem>>, vector<1x16xf32>
    tpu.vector_store %arg18[%528, %c0_129], %525 {strides = array<i32>} : memref<8x16xf32, #tpu.memory_space<vmem>>, vector<1x16xf32>,
    %c8_i32 = arith.constant 8 : i32
    %c0_130 = arith.constant 0 : index
    %c0_131 = arith.constant 0 : index
    %530 = vector.load %arg17[%c0_130, %c0_131] : memref<8x16xf32, #tpu.memory_space<vmem>>, vector<8x16xf32>
    %c0_132 = arith.constant 0 : index
    %c0_133 = arith.constant 0 : index
    %531 = vector.load %arg8[%c0_132, %c0_133] : memref<16x1xf32, #tpu.memory_space<vmem>>, vector<16x1xf32>
    %cst_134 = arith.constant dense<0.000000e+00> : vector<8x1xf32>
    %532 = tpu.matmul %530, %531, %cst_134 {dimension_numbers = #tpu.dot_dimension_numbers<[1], [0], [0], [1], [0, 0, 1, 1], [], []>} : vector<8x16xf32>, vector<16x1xf32>, vector<8x1xf32> -> vector<8x1xf32>
    %c0_135 = arith.constant 0 : index
    %c0_136 = arith.constant 0 : index
    %533 = vector.load %arg18[%c0_135, %c0_136] : memref<8x16xf32, #tpu.memory_space<vmem>>, vector<8x16xf32>
    %c0_137 = arith.constant 0 : index
    %c0_138 = arith.constant 0 : index
    %534 = vector.load %arg9[%c0_137, %c0_138] : memref<16x1xf32, #tpu.memory_space<vmem>>, vector<16x1xf32>
    %cst_139 = arith.constant dense<0.000000e+00> : vector<8x1xf32>
    %535 = tpu.matmul %533, %534, %cst_139 {dimension_numbers = #tpu.dot_dimension_numbers<[1], [0], [0], [1], [0, 0, 1, 1], [], []>} : vector<8x16xf32>, vector<16x1xf32>, vector<8x1xf32> -> vector<8x1xf32>
    %536 = arith.addf %532, %535 : vector<8x1xf32>
    %c0_140 = arith.constant 0 : index
    %c0_141 = arith.constant 0 : index
    %537 = vector.load %arg10[%c0_140, %c0_141] : memref<1x1xf32, #tpu.memory_space<vmem>>, vector<1x1xf32>
    %538 = vector.broadcast %537 : vector<1x1xf32> to vector<8x1xf32>
    %539 = arith.addf %536, %538 : vector<8x1xf32>
    %540 = tpu.concatenate %15, %539 in 1 : vector<8x1xf32>, vector<8x1xf32> -> vector<8x2xf32>
    %541 = arith.addf %5, %540 : vector<8x2xf32>
    %542 = tpu.transpose %541, [1, 0] : vector<8x2xf32> -> vector<2x8xf32>
    %cst_142 = arith.constant dense<0xFF800000> : vector<2xf32>
    %543 = vector.multi_reduction <maximumf>, %542, %cst_142 [1] : vector<2x8xf32> to vector<2xf32>
    %544 = vector.shape_cast %543 : vector<2xf32> to vector<2x1xf32>
    %545 = vector.broadcast %544 : vector<2x1xf32> to vector<2x8xf32>
    %546 = arith.subf %542, %545 : vector<2x8xf32>
    %547 = math.exp %546 : vector<2x8xf32>
    %cst_143 = arith.constant dense<0.000000e+00> : vector<2xf32>
    %548 = vector.multi_reduction <add>, %547, %cst_143 [1] : vector<2x8xf32> to vector<2xf32>
    %549 = vector.shape_cast %548 : vector<2xf32> to vector<2x1xf32>
    %550 = tpu.reciprocal %549 {approx = true} : vector<2x1xf32> -> vector<2x1xf32>
    %551 = vector.broadcast %550 : vector<2x1xf32> to vector<2x8xf32>
    %552 = arith.mulf %547, %551 : vector<2x8xf32>
    %553 = vector.extract_strided_slice %552 {offsets = [0, 0], sizes = [1, 8], strides = [1, 1]} : vector<2x8xf32> to vector<1x8xf32>
    %c0_144 = arith.constant 0 : index
    %c0_145 = arith.constant 0 : index
    %c0_146 = arith.constant 0 : index
    %554 = vector.load %arg13[%c0_144, %c0_145, %c0_146] : memref<1x1x8xf32, #tpu.memory_space<vmem>>, vector<1x1x8xf32>
    %555 = vector.shape_cast %554 : vector<1x1x8xf32> to vector<1x8xf32>
    %556 = vector.shape_cast %553 : vector<1x8xf32> to vector<1x1x8xf32>
    tpu.vector_store %arg13[%c0_144, %c0_145, %c0_146], %556 {strides = array<i32>} : memref<1x1x8xf32, #tpu.memory_space<vmem>>, vector<1x1x8xf32>,
    %557 = vector.extract_strided_slice %552 {offsets = [1, 0], sizes = [1, 8], strides = [1, 1]} : vector<2x8xf32> to vector<1x8xf32>
    %c0_147 = arith.constant 0 : index
    %c0_148 = arith.constant 0 : index
    %c0_149 = arith.constant 0 : index
    %558 = vector.load %arg14[%c0_147, %c0_148, %c0_149] : memref<1x1x8xf32, #tpu.memory_space<vmem>>, vector<1x1x8xf32>
    %559 = vector.shape_cast %558 : vector<1x1x8xf32> to vector<1x8xf32>
    %560 = vector.shape_cast %557 : vector<1x8xf32> to vector<1x1x8xf32>
    tpu.vector_store %arg14[%c0_147, %c0_148, %c0_149], %560 {strides = array<i32>} : memref<1x1x8xf32, #tpu.memory_space<vmem>>, vector<1x1x8xf32>,
    return
  }
  func.func @transform_0(%arg0: i32) -> (i32, i32, i32) {
    %c0_i32 = arith.constant 0 : i32
    %c0_i32_0 = arith.constant 0 : i32
    %c0_i32_1 = arith.constant 0 : i32
    return %arg0, %c0_i32, %c0_i32_0 : i32, i32, i32
  }
  func.func @transform_1(%arg0: i32) -> (i32, i32, i32) {
    %c0_i32 = arith.constant 0 : i32
    %c0_i32_0 = arith.constant 0 : i32
    %c0_i32_1 = arith.constant 0 : i32
    return %arg0, %c0_i32, %c0_i32_0 : i32, i32, i32
  }
  func.func @transform_2(%arg0: i32) -> (i32, i32) {
    %c0_i32 = arith.constant 0 : i32
    %c0_i32_0 = arith.constant 0 : i32
    %c0_i32_1 = arith.constant 0 : i32
    return %c0_i32, %c0_i32_0 : i32, i32
  }
  func.func @transform_3(%arg0: i32) -> (i32, i32) {
    %c0_i32 = arith.constant 0 : i32
    %c0_i32_0 = arith.constant 0 : i32
    %c0_i32_1 = arith.constant 0 : i32
    return %c0_i32, %c0_i32_0 : i32, i32
  }
  func.func @transform_4(%arg0: i32) -> (i32, i32) {
    %c0_i32 = arith.constant 0 : i32
    %c0_i32_0 = arith.constant 0 : i32
    %c0_i32_1 = arith.constant 0 : i32
    return %c0_i32, %c0_i32_0 : i32, i32
  }
  func.func @transform_5(%arg0: i32) -> (i32, i32) {
    %c0_i32 = arith.constant 0 : i32
    %c0_i32_0 = arith.constant 0 : i32
    %c0_i32_1 = arith.constant 0 : i32
    return %c0_i32, %c0_i32_0 : i32, i32
  }
  func.func @transform_6(%arg0: i32) -> (i32, i32) {
    %c0_i32 = arith.constant 0 : i32
    %c0_i32_0 = arith.constant 0 : i32
    %c0_i32_1 = arith.constant 0 : i32
    return %c0_i32, %c0_i32_0 : i32, i32
  }
  func.func @transform_7(%arg0: i32) -> (i32, i32) {
    %c0_i32 = arith.constant 0 : i32
    %c0_i32_0 = arith.constant 0 : i32
    %c0_i32_1 = arith.constant 0 : i32
    return %c0_i32, %c0_i32_0 : i32, i32
  }
  func.func @transform_8(%arg0: i32) -> (i32, i32) {
    %c0_i32 = arith.constant 0 : i32
    %c0_i32_0 = arith.constant 0 : i32
    %c0_i32_1 = arith.constant 0 : i32
    return %c0_i32, %c0_i32_0 : i32, i32
  }
  func.func @transform_9(%arg0: i32) -> (i32, i32) {
    %c0_i32 = arith.constant 0 : i32
    %c0_i32_0 = arith.constant 0 : i32
    %c0_i32_1 = arith.constant 0 : i32
    return %c0_i32, %c0_i32_0 : i32, i32
  }
  func.func @transform_10(%arg0: i32) -> (i32, i32, i32) {
    %c0_i32 = arith.constant 0 : i32
    %c0_i32_0 = arith.constant 0 : i32
    %c0_i32_1 = arith.constant 0 : i32
    return %arg0, %c0_i32, %c0_i32_0 : i32, i32, i32
  }
  func.func @transform_11(%arg0: i32) -> (i32, i32, i32) {
    %c0_i32 = arith.constant 0 : i32
    %c0_i32_0 = arith.constant 0 : i32
    %c0_i32_1 = arith.constant 0 : i32
    return %arg0, %c0_i32, %c0_i32_0 : i32, i32, i32
  }
  func.func @transform_12(%arg0: i32) -> (i32, i32, i32) {
    %c0_i32 = arith.constant 0 : i32
    %c0_i32_0 = arith.constant 0 : i32
    %c0_i32_1 = arith.constant 0 : i32
    return %arg0, %c0_i32, %c0_i32_0 : i32, i32, i32
  }
  func.func @transform_13(%arg0: i32) -> (i32, i32, i32) {
    %c0_i32 = arith.constant 0 : i32
    %c0_i32_0 = arith.constant 0 : i32
    %c0_i32_1 = arith.constant 0 : i32
    return %arg0, %c0_i32, %c0_i32_0 : i32, i32, i32
  }
}

</mosaic_0001>

<bundles_post_ra>
// kernel: output_layer_forward.1
= control target key start
LH: loop header
LB: loop body
LE: loop exit
PB: predicated region body
PF: predicated region fallthrough
CT: control target
= control target key end

     0   :  { %s3904_s0 = inlined_call_operand.vmem [shape: f32[2,8,128], index: 0, kind: input, shape index: {}]   ;;  %s3905_s1 = inlined_call_operand.vmem [shape: f32[2,8,32], index: 1, kind: input, shape index: {}]   ;;  %s3906_s2 = inlined_call_operand.vmem [shape: f32[128,2], index: 2, kind: input, shape index: {}]   ;;  %s3907_s3 = inlined_call_operand.vmem [shape: f32[32,129], index: 3, kind: input, shape index: {}]   ;;  %s3908_s4 = inlined_call_operand.vmem [shape: f32[1,129], index: 4, kind: input, shape index: {}]   ;;  %s3909_s5 = inlined_call_operand.vmem [shape: f32[16,64], index: 5, kind: input, shape index: {}]   ;;  %s3910_s6 = inlined_call_operand.vmem [shape: f32[16,64], index: 6, kind: input, shape index: {}]   ;;  %s3911_s7 = inlined_call_operand.vmem [shape: f32[16,1], index: 7, kind: input, shape index: {}]   ;;  %s3912_s8 = inlined_call_operand.vmem [shape: f32[16,1], index: 8, kind: input, shape index: {}]   ;;  %s3913_s9 = inlined_call_operand.<no memory space> [shape: f32[1,1], index: 9, kind: input, shape index: {}]   ;;  %s3914_s10 = inlined_call_operand.vmem [shape: f32[2,2,16], index: 10, kind: input, shape index: {}]   ;;  %s3915_s11 = inlined_call_operand.vmem [shape: f32[2,2,16], index: 11, kind: input, shape index: {}]   ;;  %s3916_s12 = inlined_call_operand.hbm [shape: f32[2,1,8], index: 12, kind: output, shape index: {0}]   ;;  %s3917_s13 = inlined_call_operand.hbm [shape: f32[2,1,8], index: 13, kind: output, shape index: {1}]  }
   0x1   :  { %3918 = sst [smem:[#allocation14_spill]] %s3904_s0  ;;  %v19_v0 = vstv %s3913_s9 }
   0x2   :  { %3919 = sst [smem:[#allocation15_spill]] %s3905_s1  ;;  %20 = vst [vmem:[#allocation6] sm:$0x1] %v19_v0 }
   0x3   :  { %3920 = sst [smem:[#allocation16_spill]] %s3906_s2 }
   0x4   :  { %3921 = sst [smem:[#allocation17_spill]] %s3907_s3 }
   0x5   :  { %21 = vsyncpa [#allocation8], 0 }
   0x6   :  { %23 = vsyncpa [#allocation8 + $0x1], 0 }
   0x7   :  { %24 = vsyncpa [#allocation10], 0 }
   0x8   :  { %26 = vsyncpa [#allocation10 + $0x1], 0  ;;  %s3449_s27 = smov 0   ;;  %s3451_s28 = smov 0  }
   0x9   :  { %s3453_s29 = smov 0   ;;  %s3455_s30 = smov 0  }
   0xa LB: > { %s3470_s9 = sadd.s32 4294967295, %s3363_s30   ;;  %s2717_s14 = sadd.s32 4294967294, %s3363_s30   ;;  %s3363_s30 = sphi %s3455_s30, %s3933_s30   ;;  %s3359_s29 = sphi %s3453_s29, %s3932_s29   ;;  %s3355_s28 = sphi %s3451_s28, %s3931_s28   ;;  %s3351_s27 = sphi %s3449_s27, %s3930_s27  }
   0xb   : > { %s3474_s15 = sadd.s32 1, %s3363_s30   ;;  %s311_s16 = sadd.s32 1, %s3359_s29 }
   0xc   : > { %s308_s17 = ssub.s32 %s3363_s30, %s3474_s15  ;;  %p321_p0 = scmp.ne.s32.totalorder %s3359_s29, %s3355_s28 }
   0xd   : > { %p309_p1 = scmp.eq.s32.totalorder %s308_s17, 0  ;;  %p322_p2 = scmp.eq.s32.totalorder %s3470_s9, 1 }
   0xe   : > { %p327_p3 = scmp.ne.s32.totalorder %s3355_s28, %s3351_s27  ;;  %p328_p4 = scmp.eq.s32.totalorder %s2717_s14, 1 }
   0xf   : > { %s3485_s18 = scalar_select %p309_p1, %s3359_s29, %s311_s16  }
  0x10   : > { %p3487_p5 = por %p322_p2, %p321_p0  ;;  %p3491_p6 = por %p328_p4, %p327_p3 }
  0x11   : > { %3922 = sst [smem:[#allocation13_spill]] %s3485_s18  ;;  %p2720_p7 = scmp.ge.s32.totalorder %s3363_s30, 1 }
  0x12   : > { %p424_p8 = scmp.lt.s32.totalorder %s3363_s30, 3 }
  0x14   : > { %p425_p9 = pnand %p2720_p7, %p424_p8 }
  0x15   : > { %s3925_s3 = sld [smem:[#allocation17_spill]] (!%p425_p9)  ;;  %p482_p10 = scmp.lt.s32.totalorder (!%p425_p9), %s3470_s9, 1  ;;  %v3365_v8 = vmov (!%p425_p9), 0.0   ;;  %v618_v13 = vld [vmem:[%s3909_s5] sm:$0xff] (!%p425_p9)  ;;  %v3366_v14 = vmov (!%p425_p9), 0.0|0.0   ;;  %vm3367_vm0 = vmmov (!%p425_p9), 0   ;;  %v526_v24 = vlaneseq (!%p425_p9) }
  0x16   : > { %428 = sbr.rel (%p425_p9) target bundleno = 6602 (0x19ca), region = 68  ;;  %604 = vmatprep.mubr.f32.mxu1 (!%p425_p9), %v3365_v8  ;;  %3023 = vmatprep.subr.bf16.mxu0 (!%p425_p9), %v3366_v14  ;;  %v619_v15 = vld [vmem:[%s3909_s5 + $0x8] sm:$0xff] (!%p425_p9)  ;;  %s3926_s1 = sld [smem:[#allocation15_spill]] (!%p425_p9)  ;;  %vm536_vm1 = vcmask (!%p425_p9), 261120   ;;  %v620_v19 = vld [vmem:[%s3910_s6] sm:$0xff] (!%p425_p9)  ;;  %vm625_vm2 = vcmask (!%p425_p9), 130048  }
  0x17   : > { %2882 = vmatprep.mubr.msk.f32.mxu0 (!%p425_p9), %vm3367_vm0, %v3365_v8  ;;  %v3536_v17 = vpack.c.bf16 (!%p425_p9), %v619_v15, %v618_v13  ;;  %v621_v20 = vld [vmem:[%s3910_s6 + $0x8] sm:$0xff] (!%p425_p9)  ;;  %v3574_v25 = vshrl.u32 (!%p425_p9), %v526_v24, 7  ;;  %v524_v27 = vld [vmem:[%s3908_s4] sm:$0x3] (!%p425_p9)  ;;  %vm611_vm3 = vcmask (!%p425_p9), 523264   ;;  %s3368_s18 = smov (!%p425_p9), 64  }
  0x18   : > { %v3561_v22 = vpack.c.bf16 (!%p425_p9), %v621_v20, %v620_v19  ;;  %s3369_s16 = smov (!%p425_p9), 96   ;;  %s3370_s24 = smov (!%p425_p9), 16   ;;  %vm835_vm4 = vcmask (!%p425_p9), 122880   ;;  %vm2448_vm5 = vcmask (!%p425_p9), 7168   ;;  %vm2552_vm6 = vcmask (!%p425_p9), 58368  }
  0x19   : > { %3025 = vmatpush3.bf16.msra.mxu0 (!%p425_p9), %v3536_v17  ;;  %v528_v26 = vsub.s32 (!%p425_p9), 0, %v3574_v25  ;;  %s3927_s2 = sld [smem:[#allocation16_spill]] (!%p425_p9)  ;;  %s3928_s0 = sld [smem:[#allocation14_spill]] (!%p425_p9)  ;;  %vm2564_vm7 = vcmask (!%p425_p9), 57344   ;;  %vm2566_vm8 = vcmask (!%p425_p9), 58369  }
  0x1a   : > { %3029 = vmatprep.subr.bf16.mxu0 (!%p425_p9), %v3366_v14 }
  0x1b   : > { %v517_v1 = vld [vmem:[%s3925_s3 + $0x8] sm:$0xff] (!%p425_p9)  ;;  %v519_v2 = vld [vmem:[%s3925_s3 + $0x18] sm:$0xff] (!%p425_p9)  ;;  %v516_v3 = vld [vmem:[%s3925_s3] sm:$0xff] (!%p425_p9)  ;;  %v529_v28 = vrot.slane (!%p425_p9), %v524_v27, %v528_v26 }
  0x1c   : > { %v2997_v4 = vpack.c.bf16 (!%p425_p9), %v519_v2, %v517_v1  ;;  %v518_v5 = vld [vmem:[%s3925_s3 + $0x10] sm:$0xff] (!%p425_p9)  ;;  %v521_v6 = vld [vmem:[%s3925_s3 + $0x28] sm:$0xff] (!%p425_p9)  ;;  %v523_v7 = vld [vmem:[%s3925_s3 + $0x38] sm:$0xff] (!%p425_p9) }
  0x1d   : > { %v2999_v9 = vpack.c.bf16 %v518_v5, %v516_v3  ;;  %v3001_v10 = vpack.c.bf16 %v523_v7, %v521_v6  ;;  %v520_v11 = vld [vmem:[%s3925_s3 + $0x20] sm:$0xff]  ;;  %v522_v12 = vld [vmem:[%s3925_s3 + $0x30] sm:$0xff]  ;;  %s3524_s14 = scalar_select %p482_p10, %s3470_s9, 1 }
  0x1e   : > { %2998 = vmatprep.subr.bf16.mxu1 %v2997_v4  ;;  %v3003_v16 = vpack.c.bf16 %v522_v12, %v520_v11  ;;  %s3372_s3 = smov 80  }
  0x1f   : > { %3000 = vmatpush1.bf16.msra.mxu1 %v2999_v9  ;;  %s2721_s22 = sshll.u32 %s3524_s14, 3  ;;  %s2723_s26 = sshll.u32 %s3524_s14, 1 }
  0x20   : > { %3002 = vmatprep.subr.bf16.mxu1 %v3001_v10  ;;  %s489_s25 = scalar_lea.vmem %s3926_s1, %s2721_s22  ;;  %s493_s17 = scalar_lea.vmem %s3914_s10, %s2723_s26 }
  0x21   : > { %v499_v18 = vld [vmem:[%s489_s25] sm:$0xff]  ;;  %s497_s23 = scalar_lea.vmem %s3915_s11, %s2723_s26  ;;  %s3371_s26 = smov 32  }
  0x22   : > { %v622_v21 = vld [vmem:[%s493_s17] sm:$0x3]  ;;  %s3373_s25 = smov 1  }
  0x23   : > { %3004 = vmatpush1.bf16.msra.mxu1 %v3003_v16  ;;  %v701_v23 = vrot.slane %v622_v21, 1  ;;  %v623_v49 = vld [vmem:[%s497_s23] sm:$0x3] }
  0x24   : > { %3005 = vmatprep.subr.bf16.mxu1 %v3366_v14  ;;  %v810_v50 = vrot.slane %v623_v49, 1 }
  0x26   : > { %2725 = vmatmul.mubr.msk.f32.vlgmr.msra.gmra.mrb[0].mxu1 %vm536_vm1, %v499_v18 }
  0x27   : > { %3007 = vmatpush3.bf16.msra.mxu1 %v3536_v17  ;;  %2840 = vmatprep.mubr.msk.f32.mxu1 %vm3367_vm0, %v3365_v8 }
  0x28   : > { %3008 = vmatprep.subr.bf16.mxu1 %v3366_v14 }
  0x2a   : > { %2841 = vmatmul.mubr.msk.f32.vlgmr.msra.gmra.mrb[2].mxu1 %vm625_vm2, %v622_v21 }
  0x2b   : > { %3010 = vmatpush3.bf16.msra.mxu1 %v3561_v22  ;;  %2847 = vmatprep.mubr.msk.f32.mxu1 %vm3367_vm0, %v3365_v8 }
  0x2c   : > { %3011 = vmatprep.subr.bf16.mxu1 %v3366_v14 }
  0x2e   : > { %2848 = vmatmul.mubr.msk.f32.vlgmr.msra.gmra.mrb[4].mxu1 %vm625_vm2, %v701_v23 }
  0x2f   : > { %3013 = vmatpush3.bf16.msra.mxu1 %v3536_v17  ;;  %2854 = vmatprep.mubr.msk.f32.mxu1 %vm3367_vm0, %v3365_v8 }
  0x30   : > { %3014 = vmatprep.subr.bf16.mxu1 %v3366_v14 }
  0xf9   : > { %v606_v29 = vpop.f32.mrb[0].mxu1 }
  0xfa   : > { %v607_v30 = vadd.f32 %v606_v29, %v529_v28  ;;  %v3580_v31 = vpop.f32.mrb[1].mxu1 }
  0xfc   : > { %612 = vst.msk [vmem:[#allocation2] sm:$0xff] %vm611_vm3, %v607_v30  ;;  %614 = vrot.lane.b32.xlu0 %v607_v30, %s3368_s18  ;;  %s2761_s18 = sshll.u32 %s3470_s9, 4 }
  0xfd   : > { %v695_v32 = vpop.f32.mrb[2].mxu1  ;;  %s3839_s9 = scalar_lea.hbm %s3917_s13, %s2761_s18 }
  0xfe   : > { %v2842_v33 = vpop.f32.mrb[3].mxu1 }
 0x101   : > { %v770_v34 = vpop.f32.mrb[4].mxu1 }
 0x102   : > { %v2849_v35 = vpop.f32.mrb[5].mxu1 }
 0x103   : > { %v624_v36 = vld [vmem:[#allocation2] sm:$0x1]  ;;  %v842_v10 = vld [vmem:[#allocation2 + $0x1] sm:$0x1] }
 0x104   : > { %v699_v37 = vadd.f32 %v695_v32, %v624_v36 }
 0x106   : > { %3136 = vtanh.f32 %v699_v37  ;;  %v2728_v39 = vmul.f32 -1.442695, %v699_v37 }
 0x108   : > { %3138 = vpow2.f32 %v2728_v39 }
 0x110   : > { %v3137_v38 = vpop.eup %3136 }
 0x111   : > { %788 = vrot.lane.b32.xlu0 %v3137_v38, %s3369_s16 }
 0x112   : > { %v3139_v41 = vpop.eup %3138 }
 0x113   : > { %v778_v42 = vadd.f32 1.0, %v3139_v41 }
 0x115   : > { %3140 = vrcp.f32 %v778_v42 }
 0x11f   : > { %v3141_v45 = vpop.eup %3140 }
 0x16e   : > { %v615_v40 = vpop.permute.xlu0 %614 }
 0x16f   : > { %617 = vst.msk [vmem:[#allocation3] sm:$0xff] %vm611_vm3, %v615_v40 }
 0x176   : > { %v700_v43 = vld [vmem:[#allocation3 + $0x7] sm:$0x1]  ;;  %v916_v19 = vld [vmem:[#allocation3 + $0x6] sm:$0x1] }
 0x177   : > { %v774_v44 = vadd.f32 %v770_v34, %v700_v43 }
 0x179   : > { %3142 = vtanh.f32 %v774_v44  ;;  %v2729_v51 = vmul.f32 -1.442695, %v774_v44 }
 0x17b   : > { %3144 = vpow2.f32 %v2729_v51  ;;  %v1048_v51 = vld [vmem:[#allocation2 + $0x2] sm:$0x1] }
 0x183   : > { %v3143_v46 = vpop.eup %3142  ;;  %v789_v47 = vpop.permute.xlu0 %788 }
 0x184   : > { %v791_v48 = vmul.f32 %v3141_v45, %v789_v47  ;;  %816 = vrot.lane.b32.xlu1 %v3143_v46, %s3369_s16 }
 0x185   : > { %v3145_v52 = vpop.eup %3144 }
 0x186   : > { %793 = vrot.lane.b32.xlu0 %v791_v48, %s3370_s24  ;;  %v806_v53 = vadd.f32 1.0, %v3145_v52 }
 0x188   : > { %783 = vrot.lane.b32.xlu1 %v623_v49, %s3370_s24  ;;  %3146 = vrcp.f32 %v806_v53 }
 0x18c   : > { %811 = vrot.lane.b32.xlu1 %v810_v50, %s3370_s24 }
 0x192   : > { %v3147_v54 = vpop.eup %3146 }
 0x1f6   : > { %v817_v55 = vpop.permute.xlu1 %816 }
 0x1f7   : > { %v819_v56 = vmul.f32 %v3147_v54, %v817_v55 }
 0x1f8   : > { %v794_v59 = vpop.permute.xlu0 %793 }
 0x1f9   : > { %821 = vrot.lane.b32.xlu0 %v819_v56, %s3370_s24 }
 0x1fa   : > { %v784_v57 = vpop.permute.xlu1 %783 }
 0x1fb   : > { %v786_v58 = vmul.f32 %v3141_v45, %v784_v57 }
 0x1fd   : > { %v3595_v60 = vadd.f32 %v794_v59, %v786_v58  ;;  %v1122_v58 = vld [vmem:[#allocation3 + $0x5] sm:$0x1] }
 0x1fe   : > { %v812_v62 = vpop.permute.xlu1 %811 }
 0x1ff   : > { %3148 = vtanh.f32 %v3595_v60  ;;  %v814_v63 = vmul.f32 %v3147_v54, %v812_v62 }
 0x209   : > { %v3149_v61 = vpop.eup %3148 }
 0x20a   : > { %799 = vrot.lane.b32.xlu1 %v3149_v61, %s3371_s26 }
 0x26b   : > { %v822_v0 = vpop.permute.xlu0 %821 }
 0x26c   : > { %v824_v1 = vadd.f32 %v822_v0, %v814_v63 }
 0x26e   : > { %3150 = vtanh.f32 %v824_v1 }
 0x278   : > { %v3151_v2 = vpop.eup %3150 }
 0x279   : > { %827 = vrot.lane.b32.xlu0 %v3151_v2, %s3371_s26 }
 0x27c   : > { %v800_v3 = vpop.permute.xlu1 %799 }
 0x27d   : > { %v802_v4 = vmul.f32 %v3141_v45, %v800_v3 }
 0x27f   : > { %832 = vrot.lane.b32.xlu1 %v802_v4, %s3372_s3 }
 0x2eb   : > { %v828_v5 = vpop.permute.xlu0 %827 }
 0x2ec   : > { %v830_v6 = vmul.f32 %v3147_v54, %v828_v5 }
 0x2ee   : > { %838 = vrot.lane.b32.xlu0 %v830_v6, %s3372_s3 }
 0x2f1   : > { %v833_v7 = vpop.permute.xlu1 %832 }
 0x2f2   : > { %836 = vst.msk [vmem:[#allocation4] sm:$0x1] %vm835_vm4, %v833_v7  ;;  %2855 = vmatmul.mubr.msk.f32.vlgmr.msra.gmra.mrb[6].mxu1 %vm625_vm2, %v833_v7 }
 0x2f3   : > { %3016 = vmatpush3.bf16.msra.mxu1 %v3561_v22  ;;  %2861 = vmatprep.mubr.msk.f32.mxu1 %vm3367_vm0, %v3365_v8 }
 0x2f4   : > { %3017 = vmatprep.subr.bf16.mxu1 %v3366_v14 }
 0x360   : > { %v839_v9 = vpop.permute.xlu0 %838 }
 0x361   : > { %841 = vst.msk [vmem:[#allocation5 + $0x7] sm:$0x1] %vm835_vm4, %v839_v9  ;;  %2862 = vmatmul.mubr.msk.f32.vlgmr.msra.gmra.mrb[8].mxu1 %vm625_vm2, %v839_v9 }
 0x362   : > { %3019 = vmatpush3.bf16.msra.mxu1 %v3536_v17  ;;  %2868 = vmatprep.mubr.msk.f32.mxu1 %vm3367_vm0, %v3365_v8 }
 0x363   : > { %3020 = vmatprep.subr.bf16.mxu1 %v3366_v14 }
 0x3c5   : > { %v911_v11 = vpop.f32.mrb[6].mxu1 }
 0x3c6   : > { %v915_v12 = vadd.f32 %v911_v11, %v842_v10  ;;  %v2856_v13 = vpop.f32.mrb[7].mxu1 }
 0x3c8   : > { %3152 = vtanh.f32 %v915_v12  ;;  %v2732_v16 = vmul.f32 -1.442695, %v915_v12 }
 0x3ca   : > { %3154 = vpow2.f32 %v2732_v16 }
 0x3d2   : > { %v3153_v15 = vpop.eup %3152 }
 0x3d3   : > { %999 = vrot.lane.b32.xlu1 %v3153_v15, %s3369_s16 }
 0x3d4   : > { %v3155_v18 = vpop.eup %3154 }
 0x3d5   : > { %v993_v24 = vadd.f32 1.0, %v3155_v18 }
 0x434   : > { %v985_v20 = vpop.f32.mrb[8].mxu1 }
 0x435   : > { %v989_v21 = vadd.f32 %v985_v20, %v916_v19  ;;  %v2863_v23 = vpop.f32.mrb[9].mxu1 }
 0x437   : > { %3156 = vtanh.f32 %v989_v21  ;;  %v2733_v30 = vmul.f32 -1.442695, %v989_v21 }
 0x438   : > { %3158 = vrcp.f32 %v993_v24 }
 0x439   : > { %3160 = vpow2.f32 %v2733_v30 }
 0x441   : > { %v3157_v26 = vpop.eup %3156 }
 0x442   : > { %1023 = vrot.lane.b32.xlu0 %v3157_v26, %s3369_s16  ;;  %v3159_v27 = vpop.eup %3158 }
 0x443   : > { %v3161_v32 = vpop.eup %3160  ;;  %v997_v37 = vmul.f32 %v3159_v27, %v3595_v60 }
 0x444   : > { %v1017_v33 = vadd.f32 1.0, %v3161_v32 }
 0x445   : > { %v1000_v28 = vpop.permute.xlu1 %999 }
 0x446   : > { %v1002_v29 = vmul.f32 %v3159_v27, %v1000_v28  ;;  %3162 = vrcp.f32 %v1017_v33  ;;  %v1254_v28 = vld [vmem:[#allocation2 + $0x3] sm:$0x1] }
 0x448   : > { %1004 = vrot.lane.b32.xlu1 %v1002_v29, %s3370_s24 }
 0x450   : > { %v3163_v34 = vpop.eup %3162 }
 0x451   : > { %v1021_v41 = vmul.f32 %v3163_v34, %v824_v1 }
 0x4b4   : > { %v1024_v35 = vpop.permute.xlu0 %1023 }
 0x4b5   : > { %v1026_v36 = vmul.f32 %v3163_v34, %v1024_v35 }
 0x4b7   : > { %1028 = vrot.lane.b32.xlu0 %v1026_v36, %s3370_s24  ;;  %v1328_v36 = vld [vmem:[#allocation3 + $0x4] sm:$0x1] }
 0x4ba   : > { %v1005_v38 = vpop.permute.xlu1 %1004 }
 0x4bb   : > { %v1007_v39 = vadd.f32 %v1005_v38, %v997_v37 }
 0x4bd   : > { %3164 = vtanh.f32 %v1007_v39 }
 0x4c7   : > { %v3165_v40 = vpop.eup %3164 }
 0x4c8   : > { %1010 = vrot.lane.b32.xlu1 %v3165_v40, %s3371_s26 }
 0x529   : > { %v1029_v42 = vpop.permute.xlu0 %1028 }
 0x52a   : > { %v1031_v43 = vadd.f32 %v1029_v42, %v1021_v41 }
 0x52c   : > { %3166 = vtanh.f32 %v1031_v43 }
 0x536   : > { %v3167_v44 = vpop.eup %3166 }
 0x537   : > { %1034 = vrot.lane.b32.xlu0 %v3167_v44, %s3371_s26 }
 0x53a   : > { %v1011_v45 = vpop.permute.xlu1 %1010 }
 0x53b   : > { %v1013_v46 = vmul.f32 %v3159_v27, %v1011_v45 }
 0x53d   : > { %1039 = vrot.lane.b32.xlu1 %v1013_v46, %s3372_s3 }
 0x5a9   : > { %v1035_v47 = vpop.permute.xlu0 %1034 }
 0x5aa   : > { %v1037_v48 = vmul.f32 %v3163_v34, %v1035_v47 }
 0x5ac   : > { %1044 = vrot.lane.b32.xlu0 %v1037_v48, %s3372_s3 }
 0x5af   : > { %v1040_v49 = vpop.permute.xlu1 %1039 }
 0x5b0   : > { %1042 = vst.msk [vmem:[#allocation4 + $0x1] sm:$0x1] %vm835_vm4, %v1040_v49  ;;  %2869 = vmatmul.mubr.msk.f32.vlgmr.msra.gmra.mrb[10].mxu1 %vm625_vm2, %v1040_v49 }
 0x5b1   : > { %3022 = vmatpush3.bf16.msra.mxu1 %v3561_v22  ;;  %2875 = vmatprep.mubr.msk.f32.mxu1 %vm3367_vm0, %v3365_v8 }
 0x5b2   : > { %3026 = vmatprep.subr.bf16.mxu1 %v3366_v14 }
 0x61e   : > { %v1045_v50 = vpop.permute.xlu0 %1044 }
 0x61f   : > { %1047 = vst.msk [vmem:[#allocation5 + $0x6] sm:$0x1] %vm835_vm4, %v1045_v50  ;;  %2876 = vmatmul.mubr.msk.f32.vlgmr.msra.gmra.mrb[12].mxu1 %vm625_vm2, %v1045_v50 }
 0x620   : > { %3028 = vmatpush3.bf16.msra.mxu1 %v3561_v22  ;;  %2889 = vmatprep.mubr.msk.f32.mxu1 %vm3367_vm0, %v3365_v8 }
 0x621   : > { %3032 = vmatprep.subr.bf16.mxu1 %v3366_v14 }
 0x683   : > { %v1117_v52 = vpop.f32.mrb[10].mxu1 }
 0x684   : > { %v1121_v53 = vadd.f32 %v1117_v52, %v1048_v51  ;;  %v2870_v54 = vpop.f32.mrb[11].mxu1 }
 0x686   : > { %3168 = vtanh.f32 %v1121_v53  ;;  %v2736_v56 = vmul.f32 -1.442695, %v1121_v53 }
 0x688   : > { %3170 = vpow2.f32 %v2736_v56 }
 0x690   : > { %v3169_v55 = vpop.eup %3168 }
 0x691   : > { %1205 = vrot.lane.b32.xlu1 %v3169_v55, %s3369_s16 }
 0x692   : > { %v3171_v57 = vpop.eup %3170 }
 0x693   : > { %v1199_v62 = vadd.f32 1.0, %v3171_v57 }
 0x6f2   : > { %v1191_v59 = vpop.f32.mrb[12].mxu1 }
 0x6f3   : > { %v1195_v60 = vadd.f32 %v1191_v59, %v1122_v58  ;;  %v2877_v61 = vpop.f32.mrb[13].mxu1 }
 0x6f5   : > { %3172 = vtanh.f32 %v1195_v60  ;;  %v2737_v3 = vmul.f32 -1.442695, %v1195_v60 }
 0x6f6   : > { %3174 = vrcp.f32 %v1199_v62 }
 0x6f7   : > { %3176 = vpow2.f32 %v2737_v3 }
 0x6ff   : > { %v3173_v63 = vpop.eup %3172 }
 0x700   : > { %1229 = vrot.lane.b32.xlu0 %v3173_v63, %s3369_s16  ;;  %v3175_v0 = vpop.eup %3174 }
 0x701   : > { %v3177_v4 = vpop.eup %3176  ;;  %v1203_v10 = vmul.f32 %v3175_v0, %v1007_v39 }
 0x702   : > { %v1223_v5 = vadd.f32 1.0, %v3177_v4 }
 0x703   : > { %v1206_v1 = vpop.permute.xlu1 %1205 }
 0x704   : > { %v1208_v2 = vmul.f32 %v3175_v0, %v1206_v1  ;;  %3178 = vrcp.f32 %v1223_v5  ;;  %v1460_v1 = vld [vmem:[#allocation2 + $0x4] sm:$0x1] }
 0x706   : > { %1210 = vrot.lane.b32.xlu1 %v1208_v2, %s3370_s24 }
 0x70e   : > { %v3179_v6 = vpop.eup %3178 }
 0x70f   : > { %v1227_v15 = vmul.f32 %v3179_v6, %v1031_v43 }
 0x772   : > { %v1230_v7 = vpop.permute.xlu0 %1229 }
 0x773   : > { %v1232_v9 = vmul.f32 %v3179_v6, %v1230_v7 }
 0x775   : > { %1234 = vrot.lane.b32.xlu0 %v1232_v9, %s3370_s24  ;;  %v1534_v9 = vld [vmem:[#allocation3 + $0x3] sm:$0x1] }
 0x778   : > { %v1211_v11 = vpop.permute.xlu1 %1210 }
 0x779   : > { %v1213_v12 = vadd.f32 %v1211_v11, %v1203_v10 }
 0x77b   : > { %3180 = vtanh.f32 %v1213_v12 }
 0x785   : > { %v3181_v13 = vpop.eup %3180 }
 0x786   : > { %1216 = vrot.lane.b32.xlu1 %v3181_v13, %s3371_s26 }
 0x7e7   : > { %v1235_v16 = vpop.permute.xlu0 %1234 }
 0x7e8   : > { %v1237_v18 = vadd.f32 %v1235_v16, %v1227_v15 }
 0x7ea   : > { %3182 = vtanh.f32 %v1237_v18 }
 0x7f4   : > { %v3183_v19 = vpop.eup %3182 }
 0x7f5   : > { %1240 = vrot.lane.b32.xlu0 %v3183_v19, %s3371_s26 }
 0x7f8   : > { %v1217_v20 = vpop.permute.xlu1 %1216 }
 0x7f9   : > { %v1219_v21 = vmul.f32 %v3175_v0, %v1217_v20 }
 0x7fb   : > { %1245 = vrot.lane.b32.xlu1 %v1219_v21, %s3372_s3 }
 0x867   : > { %v1241_v23 = vpop.permute.xlu0 %1240 }
 0x868   : > { %v1243_v24 = vmul.f32 %v3179_v6, %v1241_v23 }
 0x86a   : > { %1250 = vrot.lane.b32.xlu0 %v1243_v24, %s3372_s3 }
 0x86d   : > { %v1246_v26 = vpop.permute.xlu1 %1245 }
 0x86e   : > { %1248 = vst.msk [vmem:[#allocation4 + $0x2] sm:$0x1] %vm835_vm4, %v1246_v26  ;;  %2883 = vmatmul.mubr.msk.f32.vlgmr.msra.gmra.mrb[0].mxu0 %vm625_vm2, %v1246_v26 }
 0x86f   : > { %3031 = vmatpush3.bf16.msra.mxu0 %v3536_v17  ;;  %2896 = vmatprep.mubr.msk.f32.mxu0 %vm3367_vm0, %v3365_v8 }
 0x870   : > { %3035 = vmatprep.subr.bf16.mxu0 %v3366_v14 }
 0x8dc   : > { %v1251_v27 = vpop.permute.xlu0 %1250 }
 0x8dd   : > { %1253 = vst.msk [vmem:[#allocation5 + $0x5] sm:$0x1] %vm835_vm4, %v1251_v27  ;;  %2890 = vmatmul.mubr.msk.f32.vlgmr.msra.gmra.mrb[14].mxu1 %vm625_vm2, %v1251_v27 }
 0x8de   : > { %3034 = vmatpush3.bf16.msra.mxu1 %v3561_v22  ;;  %2903 = vmatprep.mubr.msk.f32.mxu1 %vm3367_vm0, %v3365_v8 }
 0x8df   : > { %3038 = vmatprep.subr.bf16.mxu1 %v3366_v14 }
 0x941   : > { %v1323_v29 = vpop.f32.mrb[0].mxu0 }
 0x942   : > { %v1327_v30 = vadd.f32 %v1323_v29, %v1254_v28  ;;  %v2884_v32 = vpop.f32.mrb[1].mxu0 }
 0x944   : > { %3184 = vtanh.f32 %v1327_v30  ;;  %v2740_v34 = vmul.f32 -1.442695, %v1327_v30 }
 0x946   : > { %3186 = vpow2.f32 %v2740_v34 }
 0x94e   : > { %v3185_v33 = vpop.eup %3184 }
 0x94f   : > { %1411 = vrot.lane.b32.xlu1 %v3185_v33, %s3369_s16 }
 0x950   : > { %v3187_v35 = vpop.eup %3186 }
 0x951   : > { %v1405_v40 = vadd.f32 1.0, %v3187_v35 }
 0x9b0   : > { %v1397_v37 = vpop.f32.mrb[14].mxu1 }
 0x9b1   : > { %v1401_v38 = vadd.f32 %v1397_v37, %v1328_v36  ;;  %v2891_v39 = vpop.f32.mrb[15].mxu1 }
 0x9b3   : > { %3188 = vtanh.f32 %v1401_v38  ;;  %v2741_v45 = vmul.f32 -1.442695, %v1401_v38 }
 0x9b4   : > { %3190 = vrcp.f32 %v1405_v40 }
 0x9b5   : > { %3192 = vpow2.f32 %v2741_v45 }
 0x9bd   : > { %v3189_v41 = vpop.eup %3188 }
 0x9be   : > { %1435 = vrot.lane.b32.xlu0 %v3189_v41, %s3369_s16  ;;  %v3191_v42 = vpop.eup %3190 }
 0x9bf   : > { %v3193_v46 = vpop.eup %3192  ;;  %v1409_v51 = vmul.f32 %v3191_v42, %v1213_v12 }
 0x9c0   : > { %v1429_v47 = vadd.f32 1.0, %v3193_v46 }
 0x9c1   : > { %v1412_v43 = vpop.permute.xlu1 %1411 }
 0x9c2   : > { %v1414_v44 = vmul.f32 %v3191_v42, %v1412_v43  ;;  %3194 = vrcp.f32 %v1429_v47  ;;  %v1666_v43 = vld [vmem:[#allocation2 + $0x5] sm:$0x1] }
 0x9c4   : > { %1416 = vrot.lane.b32.xlu1 %v1414_v44, %s3370_s24 }
 0x9cc   : > { %v3195_v48 = vpop.eup %3194 }
 0x9cd   : > { %v1433_v55 = vmul.f32 %v3195_v48, %v1237_v18 }
 0xa30   : > { %v1436_v49 = vpop.permute.xlu0 %1435 }
 0xa31   : > { %v1438_v50 = vmul.f32 %v3195_v48, %v1436_v49 }
 0xa33   : > { %1440 = vrot.lane.b32.xlu0 %v1438_v50, %s3370_s24  ;;  %v1740_v50 = vld [vmem:[#allocation3 + $0x2] sm:$0x1] }
 0xa36   : > { %v1417_v52 = vpop.permute.xlu1 %1416 }
 0xa37   : > { %v1419_v53 = vadd.f32 %v1417_v52, %v1409_v51 }
 0xa39   : > { %3196 = vtanh.f32 %v1419_v53 }
 0xa43   : > { %v3197_v54 = vpop.eup %3196 }
 0xa44   : > { %1422 = vrot.lane.b32.xlu1 %v3197_v54, %s3371_s26 }
 0xaa5   : > { %v1441_v56 = vpop.permute.xlu0 %1440 }
 0xaa6   : > { %v1443_v57 = vadd.f32 %v1441_v56, %v1433_v55 }
 0xaa8   : > { %3198 = vtanh.f32 %v1443_v57 }
 0xab2   : > { %v3199_v58 = vpop.eup %3198 }
 0xab3   : > { %1446 = vrot.lane.b32.xlu0 %v3199_v58, %s3371_s26 }
 0xab6   : > { %v1423_v59 = vpop.permute.xlu1 %1422 }
 0xab7   : > { %v1425_v60 = vmul.f32 %v3191_v42, %v1423_v59 }
 0xab9   : > { %1451 = vrot.lane.b32.xlu1 %v1425_v60, %s3372_s3 }
 0xb25   : > { %v1447_v61 = vpop.permute.xlu0 %1446 }
 0xb26   : > { %v1449_v62 = vmul.f32 %v3195_v48, %v1447_v61 }
 0xb28   : > { %1456 = vrot.lane.b32.xlu0 %v1449_v62, %s3372_s3 }
 0xb2b   : > { %v1452_v63 = vpop.permute.xlu1 %1451 }
 0xb2c   : > { %1454 = vst.msk [vmem:[#allocation4 + $0x3] sm:$0x1] %vm835_vm4, %v1452_v63  ;;  %2897 = vmatmul.mubr.msk.f32.vlgmr.msra.gmra.mrb[2].mxu0 %vm625_vm2, %v1452_v63 }
 0xb2d   : > { %3037 = vmatpush3.bf16.msra.mxu0 %v3536_v17  ;;  %2910 = vmatprep.mubr.msk.f32.mxu0 %vm3367_vm0, %v3365_v8 }
 0xb2e   : > { %3041 = vmatprep.subr.bf16.mxu0 %v3366_v14 }
 0xb9a   : > { %v1457_v0 = vpop.permute.xlu0 %1456 }
 0xb9b   : > { %1459 = vst.msk [vmem:[#allocation5 + $0x4] sm:$0x1] %vm835_vm4, %v1457_v0  ;;  %2904 = vmatmul.mubr.msk.f32.vlgmr.msra.gmra.mrb[16].mxu1 %vm625_vm2, %v1457_v0 }
 0xb9c   : > { %3040 = vmatpush3.bf16.msra.mxu1 %v3561_v22  ;;  %2917 = vmatprep.mubr.msk.f32.mxu1 %vm3367_vm0, %v3365_v8 }
 0xb9d   : > { %3044 = vmatprep.subr.bf16.mxu1 %v3366_v14 }
 0xbff   : > { %v1529_v2 = vpop.f32.mrb[2].mxu0 }
 0xc00   : > { %v1533_v3 = vadd.f32 %v1529_v2, %v1460_v1  ;;  %v2898_v4 = vpop.f32.mrb[3].mxu0 }
 0xc02   : > { %3200 = vtanh.f32 %v1533_v3  ;;  %v2744_v6 = vmul.f32 -1.442695, %v1533_v3 }
 0xc04   : > { %3202 = vpow2.f32 %v2744_v6 }
 0xc0c   : > { %v3201_v5 = vpop.eup %3200 }
 0xc0d   : > { %1617 = vrot.lane.b32.xlu1 %v3201_v5, %s3369_s16 }
 0xc0e   : > { %v3203_v7 = vpop.eup %3202 }
 0xc0f   : > { %v1611_v13 = vadd.f32 1.0, %v3203_v7 }
 0xc6e   : > { %v1603_v10 = vpop.f32.mrb[16].mxu1 }
 0xc6f   : > { %v1607_v11 = vadd.f32 %v1603_v10, %v1534_v9  ;;  %v2905_v12 = vpop.f32.mrb[17].mxu1 }
 0xc71   : > { %3204 = vtanh.f32 %v1607_v11  ;;  %v2745_v20 = vmul.f32 -1.442695, %v1607_v11 }
 0xc72   : > { %3206 = vrcp.f32 %v1611_v13 }
 0xc73   : > { %3208 = vpow2.f32 %v2745_v20 }
 0xc7b   : > { %v3205_v15 = vpop.eup %3204 }
 0xc7c   : > { %1641 = vrot.lane.b32.xlu0 %v3205_v15, %s3369_s16  ;;  %v3207_v16 = vpop.eup %3206 }
 0xc7d   : > { %v3209_v21 = vpop.eup %3208  ;;  %v1615_v28 = vmul.f32 %v3207_v16, %v1419_v53 }
 0xc7e   : > { %v1635_v23 = vadd.f32 1.0, %v3209_v21 }
 0xc7f   : > { %v1618_v18 = vpop.permute.xlu1 %1617 }
 0xc80   : > { %v1620_v19 = vmul.f32 %v3207_v16, %v1618_v18  ;;  %3210 = vrcp.f32 %v1635_v23  ;;  %v1872_v18 = vld [vmem:[#allocation2 + $0x6] sm:$0x1] }
 0xc82   : > { %1622 = vrot.lane.b32.xlu1 %v1620_v19, %s3370_s24 }
 0xc8a   : > { %v3211_v24 = vpop.eup %3210 }
 0xc8b   : > { %v1639_v33 = vmul.f32 %v3211_v24, %v1443_v57 }
 0xcee   : > { %v1642_v26 = vpop.permute.xlu0 %1641 }
 0xcef   : > { %v1644_v27 = vmul.f32 %v3211_v24, %v1642_v26  ;;  %v1946_v26 = vld [vmem:[#allocation3 + $0x1] sm:$0x1] }
 0xcf1   : > { %1646 = vrot.lane.b32.xlu0 %v1644_v27, %s3370_s24 }
 0xcf4   : > { %v1623_v29 = vpop.permute.xlu1 %1622 }
 0xcf5   : > { %v1625_v30 = vadd.f32 %v1623_v29, %v1615_v28 }
 0xcf7   : > { %3212 = vtanh.f32 %v1625_v30 }
 0xd01   : > { %v3213_v32 = vpop.eup %3212 }
 0xd02   : > { %1628 = vrot.lane.b32.xlu1 %v3213_v32, %s3371_s26 }
 0xd63   : > { %v1647_v34 = vpop.permute.xlu0 %1646 }
 0xd64   : > { %v1649_v35 = vadd.f32 %v1647_v34, %v1639_v33 }
 0xd66   : > { %3214 = vtanh.f32 %v1649_v35 }
 0xd70   : > { %v3215_v36 = vpop.eup %3214 }
 0xd71   : > { %1652 = vrot.lane.b32.xlu0 %v3215_v36, %s3371_s26 }
 0xd74   : > { %v1629_v37 = vpop.permute.xlu1 %1628 }
 0xd75   : > { %v1631_v38 = vmul.f32 %v3207_v16, %v1629_v37 }
 0xd77   : > { %1657 = vrot.lane.b32.xlu1 %v1631_v38, %s3372_s3 }
 0xde3   : > { %v1653_v39 = vpop.permute.xlu0 %1652 }
 0xde4   : > { %v1655_v40 = vmul.f32 %v3211_v24, %v1653_v39 }
 0xde6   : > { %1662 = vrot.lane.b32.xlu0 %v1655_v40, %s3372_s3 }
 0xde9   : > { %v1658_v41 = vpop.permute.xlu1 %1657 }
 0xdea   : > { %1660 = vst.msk [vmem:[#allocation4 + $0x4] sm:$0x1] %vm835_vm4, %v1658_v41  ;;  %2911 = vmatmul.mubr.msk.f32.vlgmr.msra.gmra.mrb[4].mxu0 %vm625_vm2, %v1658_v41 }
 0xdeb   : > { %3043 = vmatpush3.bf16.msra.mxu0 %v3536_v17  ;;  %2924 = vmatprep.mubr.msk.f32.mxu0 %vm3367_vm0, %v3365_v8 }
 0xdec   : > { %3047 = vmatprep.subr.bf16.mxu0 %v3366_v14 }
 0xe58   : > { %v1663_v42 = vpop.permute.xlu0 %1662 }
 0xe59   : > { %1665 = vst.msk [vmem:[#allocation5 + $0x3] sm:$0x1] %vm835_vm4, %v1663_v42  ;;  %2918 = vmatmul.mubr.msk.f32.vlgmr.msra.gmra.mrb[18].mxu1 %vm625_vm2, %v1663_v42 }
 0xe5a   : > { %3046 = vmatpush3.bf16.msra.mxu1 %v3561_v22  ;;  %2931 = vmatprep.mubr.msk.f32.mxu1 %vm3367_vm0, %v3365_v8 }
 0xe5b   : > { %3050 = vmatprep.subr.bf16.mxu1 %v3366_v14 }
 0xebd   : > { %v1735_v44 = vpop.f32.mrb[4].mxu0 }
 0xebe   : > { %v1739_v45 = vadd.f32 %v1735_v44, %v1666_v43  ;;  %v2912_v46 = vpop.f32.mrb[5].mxu0 }
 0xec0   : > { %3216 = vtanh.f32 %v1739_v45  ;;  %v2748_v48 = vmul.f32 -1.442695, %v1739_v45 }
 0xec2   : > { %3218 = vpow2.f32 %v2748_v48 }
 0xeca   : > { %v3217_v47 = vpop.eup %3216 }
 0xecb   : > { %1823 = vrot.lane.b32.xlu1 %v3217_v47, %s3369_s16 }
 0xecc   : > { %v3219_v49 = vpop.eup %3218 }
 0xecd   : > { %v1817_v54 = vadd.f32 1.0, %v3219_v49 }
 0xf2c   : > { %v1809_v51 = vpop.f32.mrb[18].mxu1 }
 0xf2d   : > { %v1813_v52 = vadd.f32 %v1809_v51, %v1740_v50  ;;  %v2919_v53 = vpop.f32.mrb[19].mxu1 }
 0xf2f   : > { %3220 = vtanh.f32 %v1813_v52  ;;  %v2749_v59 = vmul.f32 -1.442695, %v1813_v52 }
 0xf30   : > { %3222 = vrcp.f32 %v1817_v54 }
 0xf31   : > { %3224 = vpow2.f32 %v2749_v59 }
 0xf39   : > { %v3221_v55 = vpop.eup %3220 }
 0xf3a   : > { %1847 = vrot.lane.b32.xlu0 %v3221_v55, %s3369_s16  ;;  %v3223_v56 = vpop.eup %3222  ;;  %v2078_v55 = vld [vmem:[#allocation2 + $0x7] sm:$0x1] }
 0xf3b   : > { %v3225_v60 = vpop.eup %3224  ;;  %v1821_v1 = vmul.f32 %v3223_v56, %v1625_v30 }
 0xf3c   : > { %v1841_v61 = vadd.f32 1.0, %v3225_v60 }
 0xf3d   : > { %v1824_v57 = vpop.permute.xlu1 %1823 }
 0xf3e   : > { %v1826_v58 = vmul.f32 %v3223_v56, %v1824_v57  ;;  %3226 = vrcp.f32 %v1841_v61 }
 0xf40   : > { %1828 = vrot.lane.b32.xlu1 %v1826_v58, %s3370_s24 }
 0xf48   : > { %v3227_v62 = vpop.eup %3226 }
 0xf49   : > { %v1845_v5 = vmul.f32 %v3227_v62, %v1649_v35 }
 0xfac   : > { %v1848_v63 = vpop.permute.xlu0 %1847 }
 0xfad   : > { %v1850_v0 = vmul.f32 %v3227_v62, %v1848_v63 }
 0xfaf   : > { %1852 = vrot.lane.b32.xlu0 %v1850_v0, %s3370_s24 }
 0xfb2   : > { %v1829_v2 = vpop.permute.xlu1 %1828 }
 0xfb3   : > { %v1831_v3 = vadd.f32 %v1829_v2, %v1821_v1 }
 0xfb5   : > { %3228 = vtanh.f32 %v1831_v3 }
 0xfbf   : > { %v3229_v4 = vpop.eup %3228 }
 0xfc0   : > { %1834 = vrot.lane.b32.xlu1 %v3229_v4, %s3371_s26 }
0x1021   : > { %v1853_v6 = vpop.permute.xlu0 %1852 }
0x1022   : > { %v1855_v7 = vadd.f32 %v1853_v6, %v1845_v5 }
0x1024   : > { %3230 = vtanh.f32 %v1855_v7 }
0x102e   : > { %v3231_v9 = vpop.eup %3230 }
0x102f   : > { %1858 = vrot.lane.b32.xlu0 %v3231_v9, %s3371_s26 }
0x1032   : > { %v1835_v10 = vpop.permute.xlu1 %1834 }
0x1033   : > { %v1837_v11 = vmul.f32 %v3223_v56, %v1835_v10 }
0x1035   : > { %1863 = vrot.lane.b32.xlu1 %v1837_v11, %s3372_s3 }
0x10a1   : > { %v1859_v12 = vpop.permute.xlu0 %1858 }
0x10a2   : > { %v1861_v13 = vmul.f32 %v3227_v62, %v1859_v12  ;;  %v2152_v62 = vld [vmem:[#allocation3] sm:$0x1] }
0x10a4   : > { %1868 = vrot.lane.b32.xlu0 %v1861_v13, %s3372_s3 }
0x10a7   : > { %v1864_v15 = vpop.permute.xlu1 %1863 }
0x10a8   : > { %1866 = vst.msk [vmem:[#allocation4 + $0x5] sm:$0x1] %vm835_vm4, %v1864_v15  ;;  %2925 = vmatmul.mubr.msk.f32.vlgmr.msra.gmra.mrb[6].mxu0 %vm625_vm2, %v1864_v15 }
0x10a9   : > { %3049 = vmatpush3.bf16.msra.mxu0 %v3536_v17  ;;  %2938 = vmatprep.mubr.msk.f32.mxu0 %vm3367_vm0, %v3365_v8 }
0x10aa   : > { %3053 = vmatprep.subr.bf16.mxu0 %v3366_v14 }
0x1116   : > { %v1869_v16 = vpop.permute.xlu0 %1868 }
0x1117   : > { %1871 = vst.msk [vmem:[#allocation5 + $0x2] sm:$0x1] %vm835_vm4, %v1869_v16  ;;  %2932 = vmatmul.mubr.msk.f32.vlgmr.msra.gmra.mrb[20].mxu1 %vm625_vm2, %v1869_v16 }
0x1118   : > { %3052 = vmatpush3.bf16.msra.mxu1 %v3561_v22  ;;  %2945 = vmatprep.mubr.msk.f32.mxu1 %vm3367_vm0, %v3365_v8 }
0x1119   : > { %3056 = vmatprep.subr.bf16.mxu1 %v3366_v14 }
0x117b   : > { %v1941_v19 = vpop.f32.mrb[6].mxu0 }
0x117c   : > { %v1945_v17 = vadd.f32 %v1941_v19, %v1872_v18  ;;  %v2926_v20 = vpop.f32.mrb[7].mxu0 }
0x117e   : > { %3232 = vtanh.f32 %v1945_v17  ;;  %v2752_v23 = vmul.f32 -1.442695, %v1945_v17 }
0x1180   : > { %3234 = vpow2.f32 %v2752_v23  ;;  %v2285_v23 = vld [vmem:[%s3911_s7] sm:$0xff] }
0x1188   : > { %v3233_v21 = vpop.eup %3232 }
0x1189   : > { %2029 = vrot.lane.b32.xlu1 %v3233_v21, %s3369_s16 }
0x118a   : > { %v3235_v24 = vpop.eup %3234 }
0x118b   : > { %v2023_v29 = vadd.f32 1.0, %v3235_v24  ;;  %v2286_v24 = vld [vmem:[%s3911_s7 + $0x8] sm:$0xff] }
0x11ea   : > { %v2015_v27 = vpop.f32.mrb[20].mxu1 }
0x11eb   : > { %v2019_v28 = vadd.f32 %v2015_v27, %v1946_v26  ;;  %v2933_v22 = vpop.f32.mrb[21].mxu1  ;;  %v3057_v26 = vpack.c.bf16 %v2286_v24, %v2285_v23 }
0x11ed   : > { %3236 = vtanh.f32 %v2019_v28  ;;  %v2753_v35 = vmul.f32 -1.442695, %v2019_v28 }
0x11ee   : > { %3238 = vrcp.f32 %v2023_v29  ;;  %v2288_v29 = vld [vmem:[%s3912_s8] sm:$0xff] }
0x11ef   : > { %3240 = vpow2.f32 %v2753_v35 }
0x11f7   : > { %v3237_v30 = vpop.eup %3236 }
0x11f8   : > { %2053 = vrot.lane.b32.xlu0 %v3237_v30, %s3369_s16  ;;  %v3239_v32 = vpop.eup %3238  ;;  %v2289_v30 = vld [vmem:[%s3912_s8 + $0x8] sm:$0xff] }
0x11f9   : > { %v3241_v36 = vpop.eup %3240  ;;  %v2027_v41 = vmul.f32 %v3239_v32, %v1831_v3 }
0x11fa   : > { %v2047_v37 = vadd.f32 1.0, %v3241_v36 }
0x11fb   : > { %v2030_v33 = vpop.permute.xlu1 %2029 }
0x11fc   : > { %v2032_v34 = vmul.f32 %v3239_v32, %v2030_v33  ;;  %3242 = vrcp.f32 %v2047_v37 }
0x11fe   : > { %2034 = vrot.lane.b32.xlu1 %v2032_v34, %s3370_s24 }
0x1206   : > { %v3243_v38 = vpop.eup %3242 }
0x1207   : > { %v2051_v45 = vmul.f32 %v3243_v38, %v1855_v7 }
0x126a   : > { %v2054_v39 = vpop.permute.xlu0 %2053 }
0x126b   : > { %v2056_v40 = vmul.f32 %v3243_v38, %v2054_v39  ;;  %v501_v39 = vld [vmem:[%s3927_s2 + $0x8] sm:$0xff] }
0x126d   : > { %2058 = vrot.lane.b32.xlu0 %v2056_v40, %s3370_s24 }
0x1270   : > { %v2035_v42 = vpop.permute.xlu1 %2034 }
0x1271   : > { %v2037_v43 = vadd.f32 %v2035_v42, %v2027_v41  ;;  %v502_v41 = vld [vmem:[%s3927_s2 + $0x10] sm:$0xff]  ;;  %v503_v42 = vld [vmem:[%s3927_s2 + $0x18] sm:$0xff] }
0x1273   : > { %3244 = vtanh.f32 %v2037_v43 }
0x127d   : > { %v3245_v44 = vpop.eup %3244 }
0x127e   : > { %2040 = vrot.lane.b32.xlu1 %v3245_v44, %s3371_s26  ;;  %v3063_v44 = vpack.c.bf16 %v503_v42, %v502_v41 }
0x12df   : > { %v2059_v46 = vpop.permute.xlu0 %2058 }
0x12e0   : > { %v2061_v47 = vadd.f32 %v2059_v46, %v2051_v45  ;;  %v504_v45 = vld [vmem:[%s3927_s2 + $0x20] sm:$0xff]  ;;  %v505_v46 = vld [vmem:[%s3927_s2 + $0x28] sm:$0xff] }
0x12e2   : > { %3246 = vtanh.f32 %v2061_v47 }
0x12ec   : > { %v3247_v48 = vpop.eup %3246 }
0x12ed   : > { %2064 = vrot.lane.b32.xlu0 %v3247_v48, %s3371_s26  ;;  %v506_v48 = vld [vmem:[%s3927_s2 + $0x30] sm:$0xff] }
0x12f0   : > { %v2041_v49 = vpop.permute.xlu1 %2040 }
0x12f1   : > { %v2043_v50 = vmul.f32 %v3239_v32, %v2041_v49  ;;  %v3054_v32 = vpack.c.bf16 %v2289_v30, %v2288_v29 }
0x12f3   : > { %2069 = vrot.lane.b32.xlu1 %v2043_v50, %s3372_s3  ;;  %v508_v50 = vld [vmem:[%s3927_s2 + $0x40] sm:$0xff] }
0x135f   : > { %v2065_v51 = vpop.permute.xlu0 %2064 }
0x1360   : > { %v2067_v52 = vmul.f32 %v3243_v38, %v2065_v51  ;;  %v500_v38 = vld [vmem:[%s3927_s2] sm:$0xff]  ;;  %v509_v51 = vld [vmem:[%s3927_s2 + $0x48] sm:$0xff] }
0x1361   : > { %v3060_v40 = vpack.c.bf16 %v501_v39, %v500_v38 }
0x1362   : > { %2074 = vrot.lane.b32.xlu0 %v2067_v52, %s3372_s3  ;;  %v3072_v52 = vpack.c.bf16 %v509_v51, %v508_v50 }
0x1365   : > { %v2070_v53 = vpop.permute.xlu1 %2069 }
0x1366   : > { %2072 = vst.msk [vmem:[#allocation4 + $0x6] sm:$0x1] %vm835_vm4, %v2070_v53  ;;  %2939 = vmatmul.mubr.msk.f32.vlgmr.msra.gmra.mrb[8].mxu0 %vm625_vm2, %v2070_v53  ;;  %v510_v53 = vld [vmem:[%s3927_s2 + $0x50] sm:$0xff] }
0x1367   : > { %2952 = vmatprep.mubr.msk.f32.mxu0 %vm3367_vm0, %v3365_v8  ;;  %3055 = vmatpush3.bf16.msra.mxu0 %v3054_v32 }
0x1368   : > { %3059 = vmatprep.subr.bf16.mxu0 %v3366_v14 }
0x13d4   : > { %v2075_v54 = vpop.permute.xlu0 %2074 }
0x13d5   : > { %2077 = vst.msk [vmem:[#allocation5 + $0x1] sm:$0x1] %vm835_vm4, %v2075_v54  ;;  %2946 = vmatmul.mubr.msk.f32.vlgmr.msra.gmra.mrb[22].mxu1 %vm625_vm2, %v2075_v54  ;;  %v511_v54 = vld [vmem:[%s3927_s2 + $0x58] sm:$0xff] }
0x13d6   : > { %2959 = vmatprep.mubr.msk.f32.mxu1 %vm3367_vm0, %v3365_v8  ;;  %3058 = vmatpush3.bf16.msra.mxu1 %v3057_v26 }
0x1439   : > { %v2147_v56 = vpop.f32.mrb[8].mxu0 }
0x143a   : > { %v2151_v57 = vadd.f32 %v2147_v56, %v2078_v55  ;;  %v2940_v58 = vpop.f32.mrb[9].mxu0  ;;  %v3075_v55 = vpack.c.bf16 %v511_v54, %v510_v53  ;;  %v512_v56 = vld [vmem:[%s3927_s2 + $0x60] sm:$0xff] }
0x143c   : > { %3248 = vtanh.f32 %v2151_v57  ;;  %v2756_v60 = vmul.f32 -1.442695, %v2151_v57  ;;  %v513_v57 = vld [vmem:[%s3927_s2 + $0x68] sm:$0xff] }
0x143d   : > { %v3078_v58 = vpack.c.bf16 %v513_v57, %v512_v56 }
0x143e   : > { %3250 = vpow2.f32 %v2756_v60  ;;  %v515_v60 = vld [vmem:[%s3927_s2 + $0x78] sm:$0xff] }
0x1446   : > { %v3249_v59 = vpop.eup %3248 }
0x1447   : > { %2235 = vrot.lane.b32.xlu1 %v3249_v59, %s3369_s16  ;;  %v514_v59 = vld [vmem:[%s3927_s2 + $0x70] sm:$0xff] }
0x1448   : > { %v3251_v61 = vpop.eup %3250 }
0x1449   : > { %v2229_v2 = vadd.f32 1.0, %v3251_v61  ;;  %v3081_v61 = vpack.c.bf16 %v515_v60, %v514_v59 }
0x14a8   : > { %v2221_v63 = vpop.f32.mrb[22].mxu1 }
0x14a9   : > { %v2225_v0 = vadd.f32 %v2221_v63, %v2152_v62  ;;  %v2947_v1 = vpop.f32.mrb[23].mxu1 }
0x14ab   : > { %3252 = vtanh.f32 %v2225_v0  ;;  %v2757_v7 = vmul.f32 -1.442695, %v2225_v0 }
0x14ac   : > { %3254 = vrcp.f32 %v2229_v2  ;;  %v2760_v2 = vld [vmem:[#allocation6] ss:$0 sm:$0xff] }
0x14ad   : > { %3256 = vpow2.f32 %v2757_v7 }
0x14b5   : > { %v3253_v3 = vpop.eup %3252 }
0x14b6   : > { %2259 = vrot.lane.b32.xlu0 %v3253_v3, %s3369_s16  ;;  %v3255_v4 = vpop.eup %3254 }
0x14b7   : > { %v3257_v9 = vpop.eup %3256  ;;  %v2233_v15 = vmul.f32 %v3255_v4, %v2037_v43 }
0x14b8   : > { %v2253_v10 = vadd.f32 1.0, %v3257_v9  ;;  %v3268_v9 = vld [vmem:[%s3908_s4] sm:$0x3] }
0x14b9   : > { %v2236_v5 = vpop.permute.xlu1 %2235 }
0x14ba   : > { %v2238_v6 = vmul.f32 %v3255_v4, %v2236_v5  ;;  %3258 = vrcp.f32 %v2253_v10 }
0x14bc   : > { %2240 = vrot.lane.b32.xlu1 %v2238_v6, %s3370_s24 }
0x14c4   : > { %v3259_v11 = vpop.eup %3258 }
0x14c5   : > { %v2257_v17 = vmul.f32 %v3259_v11, %v2061_v47  ;;  %v3066_v47 = vpack.c.bf16 %v505_v46, %v504_v45 }
0x1528   : > { %v2260_v12 = vpop.permute.xlu0 %2259 }
0x1529   : > { %v2262_v13 = vmul.f32 %v3259_v11, %v2260_v12 }
0x152b   : > { %2264 = vrot.lane.b32.xlu0 %v2262_v13, %s3370_s24  ;;  %s485_s24 = scalar_lea.vmem %s3928_s0, %s2721_s22  ;;  %s3824_s22 = sand.u32 1, %s3355_s28  }
0x152c   : > { %v498_v62 = vld [vmem:[%s485_s24] sm:$0xff]  ;;  %s475_s16 = scalar_lea.vmem [#allocation7], %s3824_s22  ;;  %s481_s21 = scalar_lea.vmem [#allocation9], %s3824_s22 }
0x152d   : > { %s2585_s17 = sshll.u32 %s475_s16, 4  ;;  %s2569_s0 = scalar_lea.sflag [#allocation8], %s3824_s22  ;;  %s3834_s17 = int_to_ptr.vmem [resolvable:$true] %s2585_s17 }
0x152e   : > { %v2241_v16 = vpop.permute.xlu1 %2240  ;;  %s3269_s23 = scalar_lea.vmem %s3834_s17, 16  ;;  %s3374_s24 = smov [#allocation7]  }
0x152f   : > { %v2243_v18 = vadd.f32 %v2241_v16, %v2233_v15  ;;  %p3270_p11 = scmp.ne.s32.totalorder %s3834_s17, %s3269_s23  ;;  %s3273_s1 = sshll.u32 %s3374_s24, 4  ;;  %s3274_s1 = int_to_ptr.vmem [resolvable:$false] %s3273_s1 }
0x1530   : > { %p3276_p0 = scmp.lt.s32.totalorder %s3834_s17, %s3274_s1 }
0x1531   : > { %3260 = vtanh.f32 %v2243_v18  ;;  %p3271_p12 = pnand %p3270_p11, %p3487_p5 }
0x1533   : > { %p3272_p13 = pneg %p3271_p12 }
0x153b   : > { %v3261_v19 = vpop.eup %3260 }
0x153c   : > { %2246 = vrot.lane.b32.xlu1 %v3261_v19, %s3371_s26 }
0x159d   : > { %v2265_v20 = vpop.permute.xlu0 %2264 }
0x159e   : > { %v2267_v21 = vadd.f32 %v2265_v20, %v2257_v17 }
0x15a0   : > { %3262 = vtanh.f32 %v2267_v21 }
0x15aa   : > { %v3263_v27 = vpop.eup %3262 }
0x15ab   : > { %2270 = vrot.lane.b32.xlu0 %v3263_v27, %s3371_s26 }
0x15ae   : > { %v2247_v28 = vpop.permute.xlu1 %2246 }
0x15af   : > { %v2249_v22 = vmul.f32 %v3255_v4, %v2247_v28 }
0x15b1   : > { %2275 = vrot.lane.b32.xlu1 %v2249_v22, %s3372_s3 }
0x161d   : > { %v2271_v33 = vpop.permute.xlu0 %2270 }
0x161e   : > { %v2273_v34 = vmul.f32 %v3259_v11, %v2271_v33 }
0x1620   : > { %2280 = vrot.lane.b32.xlu0 %v2273_v34, %s3372_s3  ;;  %s2598_s3 = sshll.u32 %s481_s21, 4  ;;  %s3841_s3 = int_to_ptr.vmem [resolvable:$true] %s2598_s3 }
0x1623   : > { %v2276_v35 = vpop.permute.xlu1 %2275 }
0x1624   : > { %2278 = vst.msk [vmem:[#allocation4 + $0x7] sm:$0x1] %vm835_vm4, %v2276_v35 }
0x162b   : > { %v2284_v36 = vld [vmem:[#allocation4] sm:$0xff] }
0x162c   : > { %2960 = vmatmul.mubr.msk.f32.vlgmr.msra.gmra.mrb[24].mxu1 %vm625_vm2, %v2284_v36 }
0x1692   : > { %v2281_v37 = vpop.permute.xlu0 %2280 }
0x1693   : > { %2283 = vst.msk [vmem:[#allocation5] sm:$0x1] %vm835_vm4, %v2281_v37 }
0x169a   : > { %v2287_v43 = vld [vmem:[#allocation5] sm:$0xff] }
0x169b   : > { %2953 = vmatmul.mubr.msk.f32.vlgmr.msra.gmra.mrb[10].mxu0 %vm625_vm2, %v2287_v43 }
0x169c   : > { %3061 = vmatpush3.bf16.msra.mxu0 %v3060_v40  ;;  %2994 = vmatprep.mubr.msk.f32.mxu0 %vm3367_vm0, %v3365_v8  ;;  %v507_v8 = vld [vmem:[%s3927_s2 + $0x38] sm:$0xff]  ;;  %s3275_s2 = scalar_lea.vmem %s3274_s1, 32 }
0x169d   : > { %3062 = vmatprep.subr.bf16.mxu0 %v3366_v14  ;;  %v3069_v49 = vpack.c.bf16 %v507_v8, %v506_v48  ;;  %p3277_p1 = scmp.lt.s32.totalorder %s3275_s2, %s3269_s23 }
0x169f   : > { %p3278_p2 = por %p3277_p1, %p3276_p0 }
0x16a0   : > { %3064 = vmatpush3.bf16.msra.mxu0 %v3063_v44 }
0x16a1   : > { %3065 = vmatprep.subr.bf16.mxu0 %v3366_v14  ;;  %p3279_p3 = pnand %p3278_p2, %p3272_p13 }
0x16a4   : > { %3067 = vmatpush3.bf16.msra.mxu0 %v3066_v47 }
0x16a5   : > { %3068 = vmatprep.subr.bf16.mxu0 %v3366_v14 }
0x16a8   : > { %3070 = vmatpush3.bf16.msra.mxu0 %v3069_v49 }
0x16a9   : > { %3071 = vmatprep.subr.bf16.mxu0 %v3366_v14 }
0x16ac   : > { %3073 = vmatpush3.bf16.msra.mxu0 %v3072_v52 }
0x16ad   : > { %3074 = vmatprep.subr.bf16.mxu0 %v3366_v14 }
0x16b0   : > { %3076 = vmatpush3.bf16.msra.mxu0 %v3075_v55 }
0x16b1   : > { %3077 = vmatprep.subr.bf16.mxu0 %v3366_v14 }
0x16b4   : > { %3079 = vmatpush3.bf16.msra.mxu0 %v3078_v58 }
0x16b5   : > { %3080 = vmatprep.subr.bf16.mxu0 %v3366_v14  ;;  %v532_v14 = vsub.s32 1, %v3574_v25 }
0x16b7   : > { %v533_v10 = vrot.slane %v3268_v9, %v532_v14 }
0x16b8   : > { %3082 = vmatpush3.bf16.msra.mxu0 %v3081_v61 }
0x16b9   : > { %v609_v11 = vadd.f32 %v3580_v31, %v533_v10 }
0x16bb   : > { %2995 = vmatmul.mubr.f32.vlgmr.msra.gmra.mrb[12].mxu0 %v498_v62 }
0x16ff   : > { %v2432_v63 = vpop.f32.mrb[24].mxu1 }
0x1700   : > { %v2961_v0 = vpop.f32.mrb[25].mxu1 }
0x176e   : > { %v2359_v1 = vpop.f32.mrb[10].mxu0 }
0x176f   : > { %v2433_v3 = vadd.f32 %v2432_v63, %v2359_v1  ;;  %v2954_v4 = vpop.f32.mrb[11].mxu0 }
0x1771   : > { %v2443_v5 = vadd.f32 %v2760_v2, %v2433_v3 }
0x1773   : > { %2445 = vrot.lane.b32.xlu1 %v2443_v5, %s3373_s25  ;;  %s3832_s25 = scalar_lea.hbm %s3916_s12, %s2761_s18 }
0x178e   : > { %v2516_v6 = vpop.f32.mrb[12].mxu0 }
0x178f   : > { %v2996_v7 = vpop.f32.mrb[13].mxu0 }
0x17e5   : > { %v2446_v12 = vpop.permute.xlu1 %2445 }
0x17e6   : > { %v2449_v13 = vsel %vm2448_vm5, %v609_v11, %v2446_v12 }
0x17e7   : > { %v2517_v15 = vadd.f32 %v2516_v6, %v2449_v13 }
0x17e9   : > { %2520 = vxpose.xlu0.b32.start.end [1/1] (short) (narrow) %v2517_v15, 8 }
0x1869   : > { %v2536_v16 = vpop.trf.xlu0 }
0x186a   : > { %v2553_v18 = vsel %vm2552_vm6, %v2536_v16, -inf }
0x186b   : > { %2554 = vmax.xlane.f32.xlu1 %v2553_v18 }
0x18f8   : > { %v2555_v19 = vpop.xlane.xlu1 %2554 }
0x18f9   : > { %v2556_v25 = vsub.f32 %v2536_v16, %v2555_v19 }
0x18fb   : > { %v2557_v17 = vmul.f32 1.442695, %v2556_v25 }
0x18fd   : > { %3264 = vpow2.f32 %v2557_v17 }
0x1907   : > { %v3265_v20 = vpop.eup %3264 }
0x1908   : > { %v2559_v21 = vsel %vm2552_vm6, %v3265_v20, 0.0 }
0x1909   : > { %2560 = vadd.xlane.f32.xlu0 %v2559_v21 }
0x1996   : > { %v2561_v23 = vpop.xlane.xlu0 %2560 }
0x1997   : > { %3266 = vrcp.f32 %v2561_v23 }
0x19a1   : > { %v3267_v31 = vpop.eup %3266 }
0x19a2   : > { %v2563_v24 = vmul.f32 %v3267_v31, %v3265_v20 }
0x19a4   : > { %2565 = vst.msk [vmem:[%s475_s16] sm:$0x1] %vm2564_vm7, %v2563_v24 }
0x19a5   : > { %2567 = vst.msk [vmem:[%s481_s21 - $0x1] sm:$0x2] %vm2566_vm8, %v2563_v24 }
0x19a6   : > { %3282 = shalt.err (!%p3279_p3)
}
0x19a7   : > { %s3283_s18 = scalar_lea.hbm %s3832_s25, 16  ;;  %s3287_s14 = scalar_lea.hbm %s3916_s12, 32 }
0x19a8   : > { %p3284_p4 = scmp.ne.s32.totalorder %s3832_s25, %s3283_s18  ;;  %p3288_p9 = scmp.lt.u32.totalorder %s3832_s25, %s3916_s12 }
0x19a9   : > { %p3289_p10 = scmp.lt.u32.totalorder %s3287_s14, %s3283_s18  ;;  %p3291_p12 = scmp.lt.u32.totalorder %s3283_s18, %s3832_s25 }
0x19aa   : > { %p3285_p7 = pnand %p3284_p4, %p3487_p5 }
0x19ab   : > { %p3290_p11 = por %p3289_p10, %p3288_p9 }
0x19ac   : > { %p3286_p8 = pneg %p3285_p7 }
0x19ad   : > { %p3292_p13 = por %p3291_p12, %p3290_p11 }
0x19af   : > { %p3293_p0 = pnand %p3292_p13, %p3286_p8 }
0x19b1   : > { %3296 = shalt.err (!%p3293_p0)
}
0x19b2   : > { %3083 = dma.vmem_to_hbm [thread:$0]  (%p3487_p5), %s3834_s17, 16, %s3832_s25, %s2569_s0  }
0x19b3   : > { %s2573_s2 = scalar_lea.sflag [#allocation10], %s3824_s22  ;;  %s3297_s23 = scalar_lea.vmem %s3841_s3, 16 }
0x19b4   : > { %p3298_p1 = scmp.ne.s32.totalorder %s3841_s3, %s3297_s23  ;;  %s3375_s24 = smov [#allocation9]  }
0x19b5   : > { %s3301_s18 = sshll.u32 %s3375_s24, 4  ;;  %s3302_s18 = int_to_ptr.vmem [resolvable:$false] %s3301_s18 }
0x19b6   : > { %p3299_p2 = pnand %p3298_p1, %p3487_p5  ;;  %s3303_s16 = scalar_lea.vmem %s3302_s18, 32 }
0x19b7   : > { %p3304_p4 = scmp.lt.s32.totalorder %s3841_s3, %s3302_s18  ;;  %p3305_p7 = scmp.lt.s32.totalorder %s3303_s16, %s3297_s23 }
0x19b8   : > { %p3300_p3 = pneg %p3299_p2 }
0x19b9   : > { %p3306_p8 = por %p3305_p7, %p3304_p4 }
0x19bb   : > { %p3307_p9 = pnand %p3306_p8, %p3300_p3 }
0x19bd   : > { %3310 = shalt.err (!%p3307_p9)
}
0x19be   : > { %s3311_s0 = scalar_lea.hbm %s3839_s9, 16  ;;  %s3315_s25 = scalar_lea.hbm %s3917_s13, 32 }
0x19bf   : > { %p3312_p10 = scmp.ne.s32.totalorder %s3839_s9, %s3311_s0  ;;  %p3316_p13 = scmp.lt.u32.totalorder %s3839_s9, %s3917_s13 }
0x19c0   : > { %p3317_p0 = scmp.lt.u32.totalorder %s3315_s25, %s3311_s0  ;;  %p3319_p2 = scmp.lt.u32.totalorder %s3311_s0, %s3839_s9 }
0x19c1   : > { %p3313_p11 = pnand %p3312_p10, %p3487_p5 }
0x19c2   : > { %p3318_p1 = por %p3317_p0, %p3316_p13 }
0x19c3   : > { %p3314_p12 = pneg %p3313_p11 }
0x19c4   : > { %p3320_p3 = por %p3319_p2, %p3318_p1 }
0x19c6   : > { %p3321_p4 = pnand %p3320_p3, %p3314_p12 }
0x19c8   : > { %3324 = shalt.err (!%p3321_p4)
}
0x19c9   : > { %3084 = dma.vmem_to_hbm [thread:$0]  (%p3487_p5), %s3841_s3, 16, %s3839_s9, %s2573_s2  }
0x19ca PF: > { %p3094_p7 = scmp.ge.s32.totalorder %s3363_s30, 2  ;;  %s2610_s26 = sand.u32 1, %s3351_s27  }
0x19cb   : > { %s2611_s1 = scalar_lea.sflag [#allocation8], %s2610_s26 }
0x19cc   : > { %p3088_p8 = pnand %p3094_p7, %p3491_p6 }
0x19ce   : > { %3342 = dma.done.wait (!%p3088_p8), %s2611_s1, 16  }
0x19cf   : > { %3344 = vsyncadd (!%p3088_p8), %s2611_s1, 4294967280  ;;  %s2619_s23 = scalar_lea.sflag [#allocation10], %s2610_s26 }
0x19d0   : > { %3346 = dma.done.wait (!%p3088_p8), %s2619_s23, 16  }
0x19d1   : > { %3348 = vsyncadd (!%p3088_p8), %s2619_s23, 4294967280  ;;  %s3929_s19 = sld [smem:[#allocation13_spill]]  ;;  %p29_p5 = scmp.ge.s32.totalorder %s3474_s15, 4  }
0x19d2   : > { %s3930_s27 = smov %s3355_s28  ;;  %s3931_s28 = smov %s3359_s29 }
0x19d3   : > { %s3933_s30 = smov %s3474_s15  ;;  %31 = sbr.rel (!%p29_p5) target bundleno = 10 (0xa), region = 129 }
0x19d7   : > { %s3932_s29 = smov %s3929_s19 }
0x19da   :  { %2623 = vsyncpa [#allocation8], 1 }
0x19db   :  { %2625 = vsyncpa [#allocation8 + $0x1], 1 }
0x19dc   :  { %2626 = vsyncpa [#allocation10], 1 }
0x19dd   :  { %2628 = vsyncpa [#allocation10 + $0x1], 1 }

</bundles_post_ra>
